<compile_context>
chip_gen: v6e
topology: v6e:2x2x1
jax: 0.10.0
libtpu: 0.0.40
codegen_flags: <defaults>
</compile_context>

<pallas_src>
import functools

import jax
import jax.numpy as jnp
from jax.experimental import pallas as pl
from jax.experimental.pallas import tpu as pltpu

NUM_OPS = 3
LANE = 128
BN_EPS = 1e-5


def _edge_id(i, j):
    return i * (i + 1) // 2 + j


def _build_schedule(nodes):
    """Static schedule of matmul groups, each sharing a single LHS ("source").

    Group order respects data availability: h_in / h0 / g@h0 groups carry all
    loop-invariant candidates; then, as each state s_j is produced, the two
    groups (identity, aggregation) covering every future edge that reads s_j.
    Each group dict: tag (LHS name), items [(edge, op, dst_node)], finalize
    (node index completed after this group, or -1).
    """
    groups = []
    groups.append(dict(tag="h_in",
                       items=[(_edge_id(i, j), 2, i)
                              for i in range(nodes) for j in range(i + 1)],
                       finalize=-1))
    groups.append(dict(tag="h0",
                       items=[(_edge_id(i, 0), 1, i) for i in range(nodes)],
                       finalize=-1))
    groups.append(dict(tag="agg0",
                       items=[(_edge_id(i, 0), 0, i) for i in range(nodes)],
                       finalize=0))
    for j in range(1, nodes):
        groups.append(dict(tag=f"s{j}",
                           items=[(_edge_id(i, j), 1, i) for i in range(j, nodes)],
                           finalize=-1))
        groups.append(dict(tag=f"agg{j}",
                           items=[(_edge_id(i, j), 0, i) for i in range(j, nodes)],
                           finalize=j))
    return groups


def _cell_kernel(g_ref, h0_ref, hin_ref, w_hbm, gamma_ref, beta_ref, out_ref,
                 wbuf, sem, *, nodes, n, dp, schedule):
    """Whole Cell_First forward, fully unrolled (schedule is static)."""
    inv_n = 1.0 / n

    def w_copy(gi, slot):
        off = schedule[gi]["col"]
        wd = schedule[gi]["width"] * dp
        return pltpu.make_async_copy(
            w_hbm.at[:, pl.ds(off, wd)],
            wbuf.at[slot, :, pl.ds(0, wd)],
            sem.at[slot])

    # Prefetch group 0's weight slab; it overlaps with g@h0 below.
    w_copy(0, 0).start()

    g = g_ref[...]        # [n, n]   bf16
    h0 = h0_ref[...]      # [n, dp]  bf16
    hin = hin_ref[...]    # [n, dp]  bf16

    # Hoisted neighbor aggregation for the initial state (one g@h per state).
    lhs = {"h_in": hin, "h0": h0}
    lhs["agg0"] = jnp.dot(g, h0,
                          preferred_element_type=jnp.float32).astype(jnp.bfloat16)

    acc = [jnp.zeros((n, dp), jnp.float32) for _ in range(nodes)]

    num_groups = len(schedule)
    for gi in range(num_groups):
        meta = schedule[gi]
        slot = gi % 2
        off = meta["col"]
        wd = meta["width"] * dp

        # Double-buffered weight streaming: wait current, prefetch next.
        w_copy(gi, slot).wait()
        if gi + 1 < num_groups:
            w_copy(gi + 1, 1 - slot).start()

        x = lhs[meta["tag"]]                                  # [n, dp]   bf16
        wmat = wbuf[slot, :, :wd]                             # [dp, wd]  bf16
        z = jnp.dot(x, wmat, preferred_element_type=jnp.float32)   # [n, wd] f32

        # BatchNorm1d (training mode) statistics: one fused cross-sublane
        # reduce over concat(z, z*z) — per feature column, so concatenating
        # candidates along the lane axis keeps each candidate's own stats.
        zz = jnp.concatenate([z, z * z], axis=1)              # [n, 2*wd]
        s = jnp.sum(zz, axis=0, keepdims=True) * inv_n        # [1, 2*wd]
        mu = s[:, :wd]
        var = jnp.maximum(s[:, wd:] - mu * mu, 0.0)
        gam = gamma_ref[:, off:off + wd]                      # mix-w pre-folded
        bet = beta_ref[:, off:off + wd]
        a = jnp.maximum((z - mu) * jax.lax.rsqrt(var + BN_EPS) * gam + bet, 0.0)

        # Scatter the per-candidate slices into their node accumulators.
        for t, (_, _, dst) in enumerate(meta["items"]):
            acc[dst] = acc[dst] + a[:, t * dp:(t + 1) * dp]

        # If this group completed a node, emit its state (lane-dense store)
        # and prepare the dependent source values (state + hoisted g@state).
        k = meta["finalize"]
        if k >= 0:
            state = acc[k]
            out_ref[k] = state
            if k + 1 < nodes:
                s_bf = state.astype(jnp.bfloat16)
                lhs[f"s{k + 1}"] = s_bf
                lhs[f"agg{k + 1}"] = jnp.dot(
                    g, s_bf, preferred_element_type=jnp.float32
                ).astype(jnp.bfloat16)


def _pad_last(x, target):
    pad = target - x.shape[-1]
    if pad == 0:
        return x
    return jnp.pad(x, [(0, 0)] * (x.ndim - 1) + [(0, pad)])


def cell_first_forward(params, g, states, h_in, weights, nodes):
    """Mirrors Cell_First.forward; `states` is a list with one initial state."""
    assert len(states) == 1, "Cell_First is driven with a single initial state"
    h0 = states[0]
    N, D = h0.shape
    num_edges = nodes * (nodes + 1) // 2
    assert params["w_lin"].shape[0] == num_edges and weights.shape[0] == num_edges

    # Zero-pad the feature (lane) dim to a multiple of 128: every elementwise
    # op and store is lane-dense, and padded columns stay exactly zero through
    # the whole cell (W rows/cols, gamma, beta padded with zeros).
    Dp = max(LANE, ((D + LANE - 1) // LANE) * LANE)
    h0_p = _pad_last(h0.astype(jnp.float32), Dp).astype(jnp.bfloat16)
    h_in_p = _pad_last(h_in.astype(jnp.float32), Dp).astype(jnp.bfloat16)
    g_bf = g.astype(jnp.bfloat16)
    w_p = jnp.pad(params["w_lin"].astype(jnp.float32),
                  ((0, 0), (0, 0), (0, Dp - D), (0, Dp - D)))
    # Fold the strictly-positive softmax mix weights into gamma/beta:
    #   w * ReLU(gamma*zhat + beta) == ReLU((w*gamma)*zhat + (w*beta)).
    wk = weights.astype(jnp.float32)[:, :, None]               # [E, K, 1]
    gamma_p = _pad_last(params["gamma"].astype(jnp.float32), Dp) * wk
    beta_p = _pad_last(params["beta"].astype(jnp.float32), Dp) * wk
    # NOTE: params["b_lin"] is intentionally NOT passed to the kernel — a
    # per-feature Linear bias is exactly cancelled by training-mode BatchNorm.

    # Build the static batched-by-source schedule and the matching
    # concatenated weight / gamma / beta layout (one wide slab in HBM).
    schedule = _build_schedule(nodes)
    w_cols, gam_cols, bet_cols = [], [], []
    col = 0
    for meta in schedule:
        meta["col"] = col
        meta["width"] = len(meta["items"])
        for (e, op, _) in meta["items"]:
            w_cols.append(w_p[e, op])          # [Dp, Dp]
            gam_cols.append(gamma_p[e, op])    # [Dp]
            bet_cols.append(beta_p[e, op])
        col += meta["width"] * Dp
    w_all = jnp.concatenate(w_cols, axis=1).astype(jnp.bfloat16)   # [Dp, 3E*Dp]
    gamma_all = jnp.concatenate(gam_cols)[None, :]                  # [1, 3E*Dp]
    beta_all = jnp.concatenate(bet_cols)[None, :]
    max_width = max(m["width"] for m in schedule)                   # == num_edges

    kernel = functools.partial(_cell_kernel, nodes=nodes, n=N, dp=Dp,
                               schedule=schedule)

    n_cand = NUM_OPS * num_edges
    cost = pl.CostEstimate(
        flops=2 * n_cand * N * Dp * Dp + 2 * nodes * N * N * Dp,
        transcendentals=n_cand * Dp,
        bytes_accessed=(w_all.size * 2
                        + (gamma_all.size + beta_all.size) * 4
                        + (h0_p.size + h_in_p.size + g_bf.size) * 2
                        + nodes * N * Dp * 4))

    vmem = pl.BlockSpec(memory_space=pltpu.MemorySpace.VMEM)
    hbm = pl.BlockSpec(memory_space=pl.ANY)

    out = pl.pallas_call(
        kernel,
        out_shape=jax.ShapeDtypeStruct((nodes, N, Dp), jnp.float32),
        in_specs=[vmem, vmem, vmem, hbm, vmem, vmem],
        out_specs=vmem,
        scratch_shapes=[
            pltpu.VMEM((2, Dp, max_width * Dp), jnp.bfloat16),  # W double buffer
            pltpu.SemaphoreType.DMA((2,)),
        ],
        compiler_params=pltpu.CompilerParams(vmem_limit_bytes=32 * 1024 * 1024),
        cost_estimate=cost,
    )(g_bf, h0_p, h_in_p, w_all, gamma_all, beta_all)

    return [out[i, :, :D] for i in range(nodes)]


def init_params(key, num_edges, feature_dim):
    k1, k2 = jax.random.split(key)
    # nn.Linear weights stored pre-transposed as [in, out]; bias kept for
    # fidelity to nn.Linear(bias=True) but it has no effect on the output
    # (cancelled by the following training-mode BatchNorm), so it is unused.
    w_lin = 0.1 * jax.random.normal(
        k1, (num_edges, NUM_OPS, feature_dim, feature_dim), jnp.float32)
    b_lin = 0.01 * jax.random.normal(
        k2, (num_edges, NUM_OPS, feature_dim), jnp.float32)
    gamma = jnp.ones((num_edges, NUM_OPS, feature_dim), jnp.float32)
    beta = jnp.zeros((num_edges, NUM_OPS, feature_dim), jnp.float32)
    return {"w_lin": w_lin, "b_lin": b_lin, "gamma": gamma, "beta": beta}


if __name__ == "__main__":
    nodes = 3          # cell nodes -> num_edges = 1 + 2 + 3 = 6
    N = 8              # graph nodes (BatchNorm1d batch axis)
    D = 32             # feature_dim
    num_edges = nodes * (nodes + 1) // 2

    key = jax.random.PRNGKey(0)
    kg, kh, khin, kw, kp = jax.random.split(key, 5)

    g = jax.random.uniform(kg, (N, N), jnp.float32)            # dense adjacency
    h0 = jax.random.normal(kh, (N, D), jnp.float32)            # initial state
    h_in = jax.random.normal(khin, (N, D), jnp.float32)        # cell input
    weights = jax.nn.softmax(
        jax.random.normal(kw, (num_edges, NUM_OPS), jnp.float32), axis=-1)

    params = init_params(kp, num_edges, D)

    outs = cell_first_forward(params, g, [h0], h_in, weights, nodes)
    outs = [jax.block_until_ready(o) for o in outs]
    assert len(outs) == nodes and all(o.shape == (N, D) for o in outs)
    assert all(bool(jnp.all(jnp.isfinite(o))) for o in outs)
    print("KERNEL_OK")
</pallas_src>

<mosaic_0001>
module attributes {stable_mosaic.version = 11 : i64} {
  func.func @_cell_kernel(%arg0: memref<8x8xbf16, #tpu.memory_space<vmem>>, %arg1: memref<8x128xbf16, #tpu.memory_space<vmem>>, %arg2: memref<8x128xbf16, #tpu.memory_space<vmem>>, %arg3: memref<128x2304xbf16, #tpu.memory_space<any>>, %arg4: memref<1x2304xf32, #tpu.memory_space<vmem>>, %arg5: memref<1x2304xf32, #tpu.memory_space<vmem>>, %arg6: memref<3x8x128xf32, #tpu.memory_space<vmem>>, %arg7: memref<2x128x768xbf16, #tpu.memory_space<vmem>>, %arg8: memref<2x!tpu.dma_semaphore, #tpu.memory_space<semaphore_mem>>) attributes {dimension_semantics = [], scalar_prefetch = 0 : i64, scratch_operands = 2 : i64, tpu.core_type = #tpu.core_type<tc>} {
    %c0_i32 = arith.constant 0 : i32
    %c0_i32_0 = arith.constant 0 : i32
    %c0_i32_1 = arith.constant 0 : i32
    %c0_i32_2 = arith.constant 0 : i32
    %0 = tpu.memref_slice %arg3[%c0_i32_1, %c0_i32_2] : memref<128x2304xbf16, #tpu.memory_space<any>> -> memref<128x768xbf16, #tpu.memory_space<any>>
    %c0_i32_3 = arith.constant 0 : i32
    %c0_i32_4 = arith.constant 0 : i32
    %1 = tpu.memref_slice %arg7[%c0_i32, %c0_i32_3, %c0_i32_4] : memref<2x128x768xbf16, #tpu.memory_space<vmem>> -> memref<1x128x768xbf16, #tpu.memory_space<vmem>>
    %2 = tpu.memref_squeeze %1 : memref<1x128x768xbf16, #tpu.memory_space<vmem>> -> memref<128x768xbf16, #tpu.memory_space<vmem>>
    %3 = tpu.memref_slice %arg8[%c0_i32_0] : memref<2x!tpu.dma_semaphore, #tpu.memory_space<semaphore_mem>> -> memref<1x!tpu.dma_semaphore, #tpu.memory_space<semaphore_mem>>
    %4 = tpu.memref_squeeze %3 : memref<1x!tpu.dma_semaphore, #tpu.memory_space<semaphore_mem>> -> memref<!tpu.dma_semaphore, #tpu.memory_space<semaphore_mem>>
    tpu.enqueue_dma source(%0 : memref<128x768xbf16, #tpu.memory_space<any>>) target(%2 : memref<128x768xbf16, #tpu.memory_space<vmem>>) target_semaphore(%4 : memref<!tpu.dma_semaphore, #tpu.memory_space<semaphore_mem>>)
    %c0 = arith.constant 0 : index
    %c0_5 = arith.constant 0 : index
    %5 = vector.load %arg0[%c0, %c0_5] : memref<8x8xbf16, #tpu.memory_space<vmem>>, vector<8x8xbf16>
    %c0_6 = arith.constant 0 : index
    %c0_7 = arith.constant 0 : index
    %6 = vector.load %arg1[%c0_6, %c0_7] : memref<8x128xbf16, #tpu.memory_space<vmem>>, vector<8x128xbf16>
    %c0_8 = arith.constant 0 : index
    %c0_9 = arith.constant 0 : index
    %7 = vector.load %arg2[%c0_8, %c0_9] : memref<8x128xbf16, #tpu.memory_space<vmem>>, vector<8x128xbf16>
    %cst = arith.constant dense<0.000000e+00> : vector<8x128xf32>
    %8 = tpu.matmul %5, %6, %cst {dimension_numbers = #tpu.dot_dimension_numbers<[1], [0], [0], [1], [0, 0, 1, 1], [], []>} : vector<8x8xbf16>, vector<8x128xbf16>, vector<8x128xf32> -> vector<8x128xf32>
    %9 = arith.truncf %8 : vector<8x128xf32> to vector<8x128xbf16>
    %cst_10 = arith.constant 0.000000e+00 : f32
    %10 = vector.broadcast %cst_10 : f32 to vector<8x128xf32>
    %cst_11 = arith.constant 0.000000e+00 : f32
    %11 = vector.broadcast %cst_11 : f32 to vector<8x128xf32>
    %cst_12 = arith.constant 0.000000e+00 : f32
    %12 = vector.broadcast %cst_12 : f32 to vector<8x128xf32>
    %c0_i32_13 = arith.constant 0 : i32
    %c0_i32_14 = arith.constant 0 : i32
    %c0_i32_15 = arith.constant 0 : i32
    %c0_i32_16 = arith.constant 0 : i32
    %13 = tpu.memref_slice %arg3[%c0_i32_15, %c0_i32_16] : memref<128x2304xbf16, #tpu.memory_space<any>> -> memref<128x768xbf16, #tpu.memory_space<any>>
    %c0_i32_17 = arith.constant 0 : i32
    %c0_i32_18 = arith.constant 0 : i32
    %14 = tpu.memref_slice %arg7[%c0_i32_13, %c0_i32_17, %c0_i32_18] : memref<2x128x768xbf16, #tpu.memory_space<vmem>> -> memref<1x128x768xbf16, #tpu.memory_space<vmem>>
    %15 = tpu.memref_squeeze %14 : memref<1x128x768xbf16, #tpu.memory_space<vmem>> -> memref<128x768xbf16, #tpu.memory_space<vmem>>
    %16 = tpu.memref_slice %arg8[%c0_i32_14] : memref<2x!tpu.dma_semaphore, #tpu.memory_space<semaphore_mem>> -> memref<1x!tpu.dma_semaphore, #tpu.memory_space<semaphore_mem>>
    %17 = tpu.memref_squeeze %16 : memref<1x!tpu.dma_semaphore, #tpu.memory_space<semaphore_mem>> -> memref<!tpu.dma_semaphore, #tpu.memory_space<semaphore_mem>>
    tpu.wait_dma2 semaphore(%17 : memref<!tpu.dma_semaphore, #tpu.memory_space<semaphore_mem>>) src(%13 : memref<128x768xbf16, #tpu.memory_space<any>>) dst(%15 : memref<128x768xbf16, #tpu.memory_space<vmem>>)
    %c1_i32 = arith.constant 1 : i32
    %c1_i32_19 = arith.constant 1 : i32
    %c0_i32_20 = arith.constant 0 : i32
    %c768_i32 = arith.constant 768 : i32
    %18 = tpu.memref_slice %arg3[%c0_i32_20, %c768_i32] : memref<128x2304xbf16, #tpu.memory_space<any>> -> memref<128x384xbf16, #tpu.memory_space<any>>
    %c0_i32_21 = arith.constant 0 : i32
    %c0_i32_22 = arith.constant 0 : i32
    %19 = tpu.memref_slice %arg7[%c1_i32, %c0_i32_21, %c0_i32_22] : memref<2x128x768xbf16, #tpu.memory_space<vmem>> -> memref<1x128x384xbf16, #tpu.memory_space<vmem>>
    %20 = tpu.memref_squeeze %19 : memref<1x128x384xbf16, #tpu.memory_space<vmem>> -> memref<128x384xbf16, #tpu.memory_space<vmem>>
    %21 = tpu.memref_slice %arg8[%c1_i32_19] : memref<2x!tpu.dma_semaphore, #tpu.memory_space<semaphore_mem>> -> memref<1x!tpu.dma_semaphore, #tpu.memory_space<semaphore_mem>>
    %22 = tpu.memref_squeeze %21 : memref<1x!tpu.dma_semaphore, #tpu.memory_space<semaphore_mem>> -> memref<!tpu.dma_semaphore, #tpu.memory_space<semaphore_mem>>
    tpu.enqueue_dma source(%18 : memref<128x384xbf16, #tpu.memory_space<any>>) target(%20 : memref<128x384xbf16, #tpu.memory_space<vmem>>) target_semaphore(%22 : memref<!tpu.dma_semaphore, #tpu.memory_space<semaphore_mem>>)
    %c0_23 = arith.constant 0 : index
    %c0_24 = arith.constant 0 : index
    %c0_25 = arith.constant 0 : index
    %23 = vector.load %arg7[%c0_23, %c0_24, %c0_25] : memref<2x128x768xbf16, #tpu.memory_space<vmem>>, vector<1x128x768xbf16>
    %24 = vector.shape_cast %23 : vector<1x128x768xbf16> to vector<128x768xbf16>
    %cst_26 = arith.constant dense<0.000000e+00> : vector<8x768xf32>
    %25 = tpu.matmul %7, %24, %cst_26 {dimension_numbers = #tpu.dot_dimension_numbers<[1], [0], [0], [1], [0, 0, 1, 1], [], []>} : vector<8x128xbf16>, vector<128x768xbf16>, vector<8x768xf32> -> vector<8x768xf32>
    %26 = arith.mulf %25, %25 : vector<8x768xf32>
    %27 = tpu.concatenate %25, %26 in 1 : vector<8x768xf32>, vector<8x768xf32> -> vector<8x1536xf32>
    %cst_27 = arith.constant dense<0.000000e+00> : vector<1536xf32>
    %28 = vector.multi_reduction <add>, %27, %cst_27 [0] : vector<8x1536xf32> to vector<1536xf32>
    %29 = vector.shape_cast %28 : vector<1536xf32> to vector<1x1536xf32>
    %cst_28 = arith.constant 1.250000e-01 : f32
    %30 = vector.broadcast %cst_28 : f32 to vector<1x1536xf32>
    %31 = arith.mulf %29, %30 : vector<1x1536xf32>
    %32 = vector.extract_strided_slice %31 {offsets = [0, 0], sizes = [1, 768], strides = [1, 1]} : vector<1x1536xf32> to vector<1x768xf32>
    %33 = vector.extract_strided_slice %31 {offsets = [0, 768], sizes = [1, 768], strides = [1, 1]} : vector<1x1536xf32> to vector<1x768xf32>
    %34 = arith.mulf %32, %32 : vector<1x768xf32>
    %35 = arith.subf %33, %34 : vector<1x768xf32>
    %cst_29 = arith.constant 0.000000e+00 : f32
    %36 = vector.broadcast %cst_29 : f32 to vector<1x768xf32>
    %37 = arith.maximumf %35, %36 : vector<1x768xf32>
    %c0_30 = arith.constant 0 : index
    %c0_31 = arith.constant 0 : index
    %38 = vector.load %arg4[%c0_30, %c0_31] : memref<1x2304xf32, #tpu.memory_space<vmem>>, vector<1x768xf32>
    %c0_32 = arith.constant 0 : index
    %c0_33 = arith.constant 0 : index
    %39 = vector.load %arg5[%c0_32, %c0_33] : memref<1x2304xf32, #tpu.memory_space<vmem>>, vector<1x768xf32>
    %40 = vector.broadcast %32 : vector<1x768xf32> to vector<8x768xf32>
    %41 = arith.subf %25, %40 : vector<8x768xf32>
    %cst_34 = arith.constant 9.99999974E-6 : f32
    %42 = vector.broadcast %cst_34 : f32 to vector<1x768xf32>
    %43 = arith.addf %37, %42 : vector<1x768xf32>
    %44 = math.rsqrt %43 : vector<1x768xf32>
    %45 = vector.broadcast %44 : vector<1x768xf32> to vector<8x768xf32>
    %46 = arith.mulf %41, %45 : vector<8x768xf32>
    %47 = vector.broadcast %38 : vector<1x768xf32> to vector<8x768xf32>
    %48 = arith.mulf %46, %47 : vector<8x768xf32>
    %49 = vector.broadcast %39 : vector<1x768xf32> to vector<8x768xf32>
    %50 = arith.addf %48, %49 : vector<8x768xf32>
    %cst_35 = arith.constant 0.000000e+00 : f32
    %51 = vector.broadcast %cst_35 : f32 to vector<8x768xf32>
    %52 = arith.maximumf %50, %51 : vector<8x768xf32>
    %53 = vector.extract_strided_slice %52 {offsets = [0, 0], sizes = [8, 128], strides = [1, 1]} : vector<8x768xf32> to vector<8x128xf32>
    %54 = arith.addf %10, %53 : vector<8x128xf32>
    %55 = vector.extract_strided_slice %52 {offsets = [0, 128], sizes = [8, 128], strides = [1, 1]} : vector<8x768xf32> to vector<8x128xf32>
    %56 = arith.addf %11, %55 : vector<8x128xf32>
    %57 = vector.extract_strided_slice %52 {offsets = [0, 256], sizes = [8, 128], strides = [1, 1]} : vector<8x768xf32> to vector<8x128xf32>
    %58 = arith.addf %56, %57 : vector<8x128xf32>
    %59 = vector.extract_strided_slice %52 {offsets = [0, 384], sizes = [8, 128], strides = [1, 1]} : vector<8x768xf32> to vector<8x128xf32>
    %60 = arith.addf %12, %59 : vector<8x128xf32>
    %61 = vector.extract_strided_slice %52 {offsets = [0, 512], sizes = [8, 128], strides = [1, 1]} : vector<8x768xf32> to vector<8x128xf32>
    %62 = arith.addf %60, %61 : vector<8x128xf32>
    %63 = vector.extract_strided_slice %52 {offsets = [0, 640], sizes = [8, 128], strides = [1, 1]} : vector<8x768xf32> to vector<8x128xf32>
    %64 = arith.addf %62, %63 : vector<8x128xf32>
    %c1_i32_36 = arith.constant 1 : i32
    %c1_i32_37 = arith.constant 1 : i32
    %c0_i32_38 = arith.constant 0 : i32
    %c768_i32_39 = arith.constant 768 : i32
    %65 = tpu.memref_slice %arg3[%c0_i32_38, %c768_i32_39] : memref<128x2304xbf16, #tpu.memory_space<any>> -> memref<128x384xbf16, #tpu.memory_space<any>>
    %c0_i32_40 = arith.constant 0 : i32
    %c0_i32_41 = arith.constant 0 : i32
    %66 = tpu.memref_slice %arg7[%c1_i32_36, %c0_i32_40, %c0_i32_41] : memref<2x128x768xbf16, #tpu.memory_space<vmem>> -> memref<1x128x384xbf16, #tpu.memory_space<vmem>>
    %67 = tpu.memref_squeeze %66 : memref<1x128x384xbf16, #tpu.memory_space<vmem>> -> memref<128x384xbf16, #tpu.memory_space<vmem>>
    %68 = tpu.memref_slice %arg8[%c1_i32_37] : memref<2x!tpu.dma_semaphore, #tpu.memory_space<semaphore_mem>> -> memref<1x!tpu.dma_semaphore, #tpu.memory_space<semaphore_mem>>
    %69 = tpu.memref_squeeze %68 : memref<1x!tpu.dma_semaphore, #tpu.memory_space<semaphore_mem>> -> memref<!tpu.dma_semaphore, #tpu.memory_space<semaphore_mem>>
    tpu.wait_dma2 semaphore(%69 : memref<!tpu.dma_semaphore, #tpu.memory_space<semaphore_mem>>) src(%65 : memref<128x384xbf16, #tpu.memory_space<any>>) dst(%67 : memref<128x384xbf16, #tpu.memory_space<vmem>>)
    %c0_i32_42 = arith.constant 0 : i32
    %c0_i32_43 = arith.constant 0 : i32
    %c0_i32_44 = arith.constant 0 : i32
    %c1152_i32 = arith.constant 1152 : i32
    %70 = tpu.memref_slice %arg3[%c0_i32_44, %c1152_i32] : memref<128x2304xbf16, #tpu.memory_space<any>> -> memref<128x384xbf16, #tpu.memory_space<any>>
    %c0_i32_45 = arith.constant 0 : i32
    %c0_i32_46 = arith.constant 0 : i32
    %71 = tpu.memref_slice %arg7[%c0_i32_42, %c0_i32_45, %c0_i32_46] : memref<2x128x768xbf16, #tpu.memory_space<vmem>> -> memref<1x128x384xbf16, #tpu.memory_space<vmem>>
    %72 = tpu.memref_squeeze %71 : memref<1x128x384xbf16, #tpu.memory_space<vmem>> -> memref<128x384xbf16, #tpu.memory_space<vmem>>
    %73 = tpu.memref_slice %arg8[%c0_i32_43] : memref<2x!tpu.dma_semaphore, #tpu.memory_space<semaphore_mem>> -> memref<1x!tpu.dma_semaphore, #tpu.memory_space<semaphore_mem>>
    %74 = tpu.memref_squeeze %73 : memref<1x!tpu.dma_semaphore, #tpu.memory_space<semaphore_mem>> -> memref<!tpu.dma_semaphore, #tpu.memory_space<semaphore_mem>>
    tpu.enqueue_dma source(%70 : memref<128x384xbf16, #tpu.memory_space<any>>) target(%72 : memref<128x384xbf16, #tpu.memory_space<vmem>>) target_semaphore(%74 : memref<!tpu.dma_semaphore, #tpu.memory_space<semaphore_mem>>)
    %c1 = arith.constant 1 : index
    %c0_47 = arith.constant 0 : index
    %c0_48 = arith.constant 0 : index
    %75 = vector.load %arg7[%c1, %c0_47, %c0_48] : memref<2x128x768xbf16, #tpu.memory_space<vmem>>, vector<1x128x384xbf16>
    %76 = vector.shape_cast %75 : vector<1x128x384xbf16> to vector<128x384xbf16>
    %cst_49 = arith.constant dense<0.000000e+00> : vector<8x384xf32>
    %77 = tpu.matmul %6, %76, %cst_49 {dimension_numbers = #tpu.dot_dimension_numbers<[1], [0], [0], [1], [0, 0, 1, 1], [], []>} : vector<8x128xbf16>, vector<128x384xbf16>, vector<8x384xf32> -> vector<8x384xf32>
    %78 = arith.mulf %77, %77 : vector<8x384xf32>
    %79 = tpu.concatenate %77, %78 in 1 : vector<8x384xf32>, vector<8x384xf32> -> vector<8x768xf32>
    %cst_50 = arith.constant dense<0.000000e+00> : vector<768xf32>
    %80 = vector.multi_reduction <add>, %79, %cst_50 [0] : vector<8x768xf32> to vector<768xf32>
    %81 = vector.shape_cast %80 : vector<768xf32> to vector<1x768xf32>
    %cst_51 = arith.constant 1.250000e-01 : f32
    %82 = vector.broadcast %cst_51 : f32 to vector<1x768xf32>
    %83 = arith.mulf %81, %82 : vector<1x768xf32>
    %84 = vector.extract_strided_slice %83 {offsets = [0, 0], sizes = [1, 384], strides = [1, 1]} : vector<1x768xf32> to vector<1x384xf32>
    %85 = vector.extract_strided_slice %83 {offsets = [0, 384], sizes = [1, 384], strides = [1, 1]} : vector<1x768xf32> to vector<1x384xf32>
    %86 = arith.mulf %84, %84 : vector<1x384xf32>
    %87 = arith.subf %85, %86 : vector<1x384xf32>
    %cst_52 = arith.constant 0.000000e+00 : f32
    %88 = vector.broadcast %cst_52 : f32 to vector<1x384xf32>
    %89 = arith.maximumf %87, %88 : vector<1x384xf32>
    %c0_53 = arith.constant 0 : index
    %c768 = arith.constant 768 : index
    %90 = vector.load %arg4[%c0_53, %c768] : memref<1x2304xf32, #tpu.memory_space<vmem>>, vector<1x384xf32>
    %c0_54 = arith.constant 0 : index
    %c768_55 = arith.constant 768 : index
    %91 = vector.load %arg5[%c0_54, %c768_55] : memref<1x2304xf32, #tpu.memory_space<vmem>>, vector<1x384xf32>
    %92 = vector.broadcast %84 : vector<1x384xf32> to vector<8x384xf32>
    %93 = arith.subf %77, %92 : vector<8x384xf32>
    %cst_56 = arith.constant 9.99999974E-6 : f32
    %94 = vector.broadcast %cst_56 : f32 to vector<1x384xf32>
    %95 = arith.addf %89, %94 : vector<1x384xf32>
    %96 = math.rsqrt %95 : vector<1x384xf32>
    %97 = vector.broadcast %96 : vector<1x384xf32> to vector<8x384xf32>
    %98 = arith.mulf %93, %97 : vector<8x384xf32>
    %99 = vector.broadcast %90 : vector<1x384xf32> to vector<8x384xf32>
    %100 = arith.mulf %98, %99 : vector<8x384xf32>
    %101 = vector.broadcast %91 : vector<1x384xf32> to vector<8x384xf32>
    %102 = arith.addf %100, %101 : vector<8x384xf32>
    %cst_57 = arith.constant 0.000000e+00 : f32
    %103 = vector.broadcast %cst_57 : f32 to vector<8x384xf32>
    %104 = arith.maximumf %102, %103 : vector<8x384xf32>
    %105 = vector.extract_strided_slice %104 {offsets = [0, 0], sizes = [8, 128], strides = [1, 1]} : vector<8x384xf32> to vector<8x128xf32>
    %106 = arith.addf %54, %105 : vector<8x128xf32>
    %107 = vector.extract_strided_slice %104 {offsets = [0, 128], sizes = [8, 128], strides = [1, 1]} : vector<8x384xf32> to vector<8x128xf32>
    %108 = arith.addf %58, %107 : vector<8x128xf32>
    %109 = vector.extract_strided_slice %104 {offsets = [0, 256], sizes = [8, 128], strides = [1, 1]} : vector<8x384xf32> to vector<8x128xf32>
    %110 = arith.addf %64, %109 : vector<8x128xf32>
    %c0_i32_58 = arith.constant 0 : i32
    %c0_i32_59 = arith.constant 0 : i32
    %c0_i32_60 = arith.constant 0 : i32
    %c1152_i32_61 = arith.constant 1152 : i32
    %111 = tpu.memref_slice %arg3[%c0_i32_60, %c1152_i32_61] : memref<128x2304xbf16, #tpu.memory_space<any>> -> memref<128x384xbf16, #tpu.memory_space<any>>
    %c0_i32_62 = arith.constant 0 : i32
    %c0_i32_63 = arith.constant 0 : i32
    %112 = tpu.memref_slice %arg7[%c0_i32_58, %c0_i32_62, %c0_i32_63] : memref<2x128x768xbf16, #tpu.memory_space<vmem>> -> memref<1x128x384xbf16, #tpu.memory_space<vmem>>
    %113 = tpu.memref_squeeze %112 : memref<1x128x384xbf16, #tpu.memory_space<vmem>> -> memref<128x384xbf16, #tpu.memory_space<vmem>>
    %114 = tpu.memref_slice %arg8[%c0_i32_59] : memref<2x!tpu.dma_semaphore, #tpu.memory_space<semaphore_mem>> -> memref<1x!tpu.dma_semaphore, #tpu.memory_space<semaphore_mem>>
    %115 = tpu.memref_squeeze %114 : memref<1x!tpu.dma_semaphore, #tpu.memory_space<semaphore_mem>> -> memref<!tpu.dma_semaphore, #tpu.memory_space<semaphore_mem>>
    tpu.wait_dma2 semaphore(%115 : memref<!tpu.dma_semaphore, #tpu.memory_space<semaphore_mem>>) src(%111 : memref<128x384xbf16, #tpu.memory_space<any>>) dst(%113 : memref<128x384xbf16, #tpu.memory_space<vmem>>)
    %c1_i32_64 = arith.constant 1 : i32
    %c1_i32_65 = arith.constant 1 : i32
    %c0_i32_66 = arith.constant 0 : i32
    %c1536_i32 = arith.constant 1536 : i32
    %116 = tpu.memref_slice %arg3[%c0_i32_66, %c1536_i32] : memref<128x2304xbf16, #tpu.memory_space<any>> -> memref<128x256xbf16, #tpu.memory_space<any>>
    %c0_i32_67 = arith.constant 0 : i32
    %c0_i32_68 = arith.constant 0 : i32
    %117 = tpu.memref_slice %arg7[%c1_i32_64, %c0_i32_67, %c0_i32_68] : memref<2x128x768xbf16, #tpu.memory_space<vmem>> -> memref<1x128x256xbf16, #tpu.memory_space<vmem>>
    %118 = tpu.memref_squeeze %117 : memref<1x128x256xbf16, #tpu.memory_space<vmem>> -> memref<128x256xbf16, #tpu.memory_space<vmem>>
    %119 = tpu.memref_slice %arg8[%c1_i32_65] : memref<2x!tpu.dma_semaphore, #tpu.memory_space<semaphore_mem>> -> memref<1x!tpu.dma_semaphore, #tpu.memory_space<semaphore_mem>>
    %120 = tpu.memref_squeeze %119 : memref<1x!tpu.dma_semaphore, #tpu.memory_space<semaphore_mem>> -> memref<!tpu.dma_semaphore, #tpu.memory_space<semaphore_mem>>
    tpu.enqueue_dma source(%116 : memref<128x256xbf16, #tpu.memory_space<any>>) target(%118 : memref<128x256xbf16, #tpu.memory_space<vmem>>) target_semaphore(%120 : memref<!tpu.dma_semaphore, #tpu.memory_space<semaphore_mem>>)
    %c0_69 = arith.constant 0 : index
    %c0_70 = arith.constant 0 : index
    %c0_71 = arith.constant 0 : index
    %121 = vector.load %arg7[%c0_69, %c0_70, %c0_71] : memref<2x128x768xbf16, #tpu.memory_space<vmem>>, vector<1x128x384xbf16>
    %122 = vector.shape_cast %121 : vector<1x128x384xbf16> to vector<128x384xbf16>
    %cst_72 = arith.constant dense<0.000000e+00> : vector<8x384xf32>
    %123 = tpu.matmul %9, %122, %cst_72 {dimension_numbers = #tpu.dot_dimension_numbers<[1], [0], [0], [1], [0, 0, 1, 1], [], []>} : vector<8x128xbf16>, vector<128x384xbf16>, vector<8x384xf32> -> vector<8x384xf32>
    %124 = arith.mulf %123, %123 : vector<8x384xf32>
    %125 = tpu.concatenate %123, %124 in 1 : vector<8x384xf32>, vector<8x384xf32> -> vector<8x768xf32>
    %cst_73 = arith.constant dense<0.000000e+00> : vector<768xf32>
    %126 = vector.multi_reduction <add>, %125, %cst_73 [0] : vector<8x768xf32> to vector<768xf32>
    %127 = vector.shape_cast %126 : vector<768xf32> to vector<1x768xf32>
    %cst_74 = arith.constant 1.250000e-01 : f32
    %128 = vector.broadcast %cst_74 : f32 to vector<1x768xf32>
    %129 = arith.mulf %127, %128 : vector<1x768xf32>
    %130 = vector.extract_strided_slice %129 {offsets = [0, 0], sizes = [1, 384], strides = [1, 1]} : vector<1x768xf32> to vector<1x384xf32>
    %131 = vector.extract_strided_slice %129 {offsets = [0, 384], sizes = [1, 384], strides = [1, 1]} : vector<1x768xf32> to vector<1x384xf32>
    %132 = arith.mulf %130, %130 : vector<1x384xf32>
    %133 = arith.subf %131, %132 : vector<1x384xf32>
    %cst_75 = arith.constant 0.000000e+00 : f32
    %134 = vector.broadcast %cst_75 : f32 to vector<1x384xf32>
    %135 = arith.maximumf %133, %134 : vector<1x384xf32>
    %c0_76 = arith.constant 0 : index
    %c1152 = arith.constant 1152 : index
    %136 = vector.load %arg4[%c0_76, %c1152] : memref<1x2304xf32, #tpu.memory_space<vmem>>, vector<1x384xf32>
    %c0_77 = arith.constant 0 : index
    %c1152_78 = arith.constant 1152 : index
    %137 = vector.load %arg5[%c0_77, %c1152_78] : memref<1x2304xf32, #tpu.memory_space<vmem>>, vector<1x384xf32>
    %138 = vector.broadcast %130 : vector<1x384xf32> to vector<8x384xf32>
    %139 = arith.subf %123, %138 : vector<8x384xf32>
    %cst_79 = arith.constant 9.99999974E-6 : f32
    %140 = vector.broadcast %cst_79 : f32 to vector<1x384xf32>
    %141 = arith.addf %135, %140 : vector<1x384xf32>
    %142 = math.rsqrt %141 : vector<1x384xf32>
    %143 = vector.broadcast %142 : vector<1x384xf32> to vector<8x384xf32>
    %144 = arith.mulf %139, %143 : vector<8x384xf32>
    %145 = vector.broadcast %136 : vector<1x384xf32> to vector<8x384xf32>
    %146 = arith.mulf %144, %145 : vector<8x384xf32>
    %147 = vector.broadcast %137 : vector<1x384xf32> to vector<8x384xf32>
    %148 = arith.addf %146, %147 : vector<8x384xf32>
    %cst_80 = arith.constant 0.000000e+00 : f32
    %149 = vector.broadcast %cst_80 : f32 to vector<8x384xf32>
    %150 = arith.maximumf %148, %149 : vector<8x384xf32>
    %151 = vector.extract_strided_slice %150 {offsets = [0, 0], sizes = [8, 128], strides = [1, 1]} : vector<8x384xf32> to vector<8x128xf32>
    %152 = arith.addf %106, %151 : vector<8x128xf32>
    %153 = vector.extract_strided_slice %150 {offsets = [0, 128], sizes = [8, 128], strides = [1, 1]} : vector<8x384xf32> to vector<8x128xf32>
    %154 = arith.addf %108, %153 : vector<8x128xf32>
    %155 = vector.extract_strided_slice %150 {offsets = [0, 256], sizes = [8, 128], strides = [1, 1]} : vector<8x384xf32> to vector<8x128xf32>
    %156 = arith.addf %110, %155 : vector<8x128xf32>
    %c0_81 = arith.constant 0 : index
    %c0_82 = arith.constant 0 : index
    %c0_83 = arith.constant 0 : index
    %157 = vector.load %arg6[%c0_81, %c0_82, %c0_83] : memref<3x8x128xf32, #tpu.memory_space<vmem>>, vector<1x8x128xf32>
    %158 = vector.shape_cast %157 : vector<1x8x128xf32> to vector<8x128xf32>
    %159 = vector.shape_cast %152 : vector<8x128xf32> to vector<1x8x128xf32>
    tpu.vector_store %arg6[%c0_81, %c0_82, %c0_83], %159 {strides = array<i32>} : memref<3x8x128xf32, #tpu.memory_space<vmem>>, vector<1x8x128xf32>,
    %160 = arith.truncf %152 : vector<8x128xf32> to vector<8x128xbf16>
    %cst_84 = arith.constant dense<0.000000e+00> : vector<8x128xf32>
    %161 = tpu.matmul %5, %160, %cst_84 {dimension_numbers = #tpu.dot_dimension_numbers<[1], [0], [0], [1], [0, 0, 1, 1], [], []>} : vector<8x8xbf16>, vector<8x128xbf16>, vector<8x128xf32> -> vector<8x128xf32>
    %162 = arith.truncf %161 : vector<8x128xf32> to vector<8x128xbf16>
    %c1_i32_85 = arith.constant 1 : i32
    %c1_i32_86 = arith.constant 1 : i32
    %c0_i32_87 = arith.constant 0 : i32
    %c1536_i32_88 = arith.constant 1536 : i32
    %163 = tpu.memref_slice %arg3[%c0_i32_87, %c1536_i32_88] : memref<128x2304xbf16, #tpu.memory_space<any>> -> memref<128x256xbf16, #tpu.memory_space<any>>
    %c0_i32_89 = arith.constant 0 : i32
    %c0_i32_90 = arith.constant 0 : i32
    %164 = tpu.memref_slice %arg7[%c1_i32_85, %c0_i32_89, %c0_i32_90] : memref<2x128x768xbf16, #tpu.memory_space<vmem>> -> memref<1x128x256xbf16, #tpu.memory_space<vmem>>
    %165 = tpu.memref_squeeze %164 : memref<1x128x256xbf16, #tpu.memory_space<vmem>> -> memref<128x256xbf16, #tpu.memory_space<vmem>>
    %166 = tpu.memref_slice %arg8[%c1_i32_86] : memref<2x!tpu.dma_semaphore, #tpu.memory_space<semaphore_mem>> -> memref<1x!tpu.dma_semaphore, #tpu.memory_space<semaphore_mem>>
    %167 = tpu.memref_squeeze %166 : memref<1x!tpu.dma_semaphore, #tpu.memory_space<semaphore_mem>> -> memref<!tpu.dma_semaphore, #tpu.memory_space<semaphore_mem>>
    tpu.wait_dma2 semaphore(%167 : memref<!tpu.dma_semaphore, #tpu.memory_space<semaphore_mem>>) src(%163 : memref<128x256xbf16, #tpu.memory_space<any>>) dst(%165 : memref<128x256xbf16, #tpu.memory_space<vmem>>)
    %c0_i32_91 = arith.constant 0 : i32
    %c0_i32_92 = arith.constant 0 : i32
    %c0_i32_93 = arith.constant 0 : i32
    %c1792_i32 = arith.constant 1792 : i32
    %168 = tpu.memref_slice %arg3[%c0_i32_93, %c1792_i32] : memref<128x2304xbf16, #tpu.memory_space<any>> -> memref<128x256xbf16, #tpu.memory_space<any>>
    %c0_i32_94 = arith.constant 0 : i32
    %c0_i32_95 = arith.constant 0 : i32
    %169 = tpu.memref_slice %arg7[%c0_i32_91, %c0_i32_94, %c0_i32_95] : memref<2x128x768xbf16, #tpu.memory_space<vmem>> -> memref<1x128x256xbf16, #tpu.memory_space<vmem>>
    %170 = tpu.memref_squeeze %169 : memref<1x128x256xbf16, #tpu.memory_space<vmem>> -> memref<128x256xbf16, #tpu.memory_space<vmem>>
    %171 = tpu.memref_slice %arg8[%c0_i32_92] : memref<2x!tpu.dma_semaphore, #tpu.memory_space<semaphore_mem>> -> memref<1x!tpu.dma_semaphore, #tpu.memory_space<semaphore_mem>>
    %172 = tpu.memref_squeeze %171 : memref<1x!tpu.dma_semaphore, #tpu.memory_space<semaphore_mem>> -> memref<!tpu.dma_semaphore, #tpu.memory_space<semaphore_mem>>
    tpu.enqueue_dma source(%168 : memref<128x256xbf16, #tpu.memory_space<any>>) target(%170 : memref<128x256xbf16, #tpu.memory_space<vmem>>) target_semaphore(%172 : memref<!tpu.dma_semaphore, #tpu.memory_space<semaphore_mem>>)
    %c1_96 = arith.constant 1 : index
    %c0_97 = arith.constant 0 : index
    %c0_98 = arith.constant 0 : index
    %173 = vector.load %arg7[%c1_96, %c0_97, %c0_98] : memref<2x128x768xbf16, #tpu.memory_space<vmem>>, vector<1x128x256xbf16>
    %174 = vector.shape_cast %173 : vector<1x128x256xbf16> to vector<128x256xbf16>
    %cst_99 = arith.constant dense<0.000000e+00> : vector<8x256xf32>
    %175 = tpu.matmul %160, %174, %cst_99 {dimension_numbers = #tpu.dot_dimension_numbers<[1], [0], [0], [1], [0, 0, 1, 1], [], []>} : vector<8x128xbf16>, vector<128x256xbf16>, vector<8x256xf32> -> vector<8x256xf32>
    %176 = arith.mulf %175, %175 : vector<8x256xf32>
    %177 = tpu.concatenate %175, %176 in 1 : vector<8x256xf32>, vector<8x256xf32> -> vector<8x512xf32>
    %cst_100 = arith.constant dense<0.000000e+00> : vector<512xf32>
    %178 = vector.multi_reduction <add>, %177, %cst_100 [0] : vector<8x512xf32> to vector<512xf32>
    %179 = vector.shape_cast %178 : vector<512xf32> to vector<1x512xf32>
    %cst_101 = arith.constant 1.250000e-01 : f32
    %180 = vector.broadcast %cst_101 : f32 to vector<1x512xf32>
    %181 = arith.mulf %179, %180 : vector<1x512xf32>
    %182 = vector.extract_strided_slice %181 {offsets = [0, 0], sizes = [1, 256], strides = [1, 1]} : vector<1x512xf32> to vector<1x256xf32>
    %183 = vector.extract_strided_slice %181 {offsets = [0, 256], sizes = [1, 256], strides = [1, 1]} : vector<1x512xf32> to vector<1x256xf32>
    %184 = arith.mulf %182, %182 : vector<1x256xf32>
    %185 = arith.subf %183, %184 : vector<1x256xf32>
    %cst_102 = arith.constant 0.000000e+00 : f32
    %186 = vector.broadcast %cst_102 : f32 to vector<1x256xf32>
    %187 = arith.maximumf %185, %186 : vector<1x256xf32>
    %c0_103 = arith.constant 0 : index
    %c1536 = arith.constant 1536 : index
    %188 = vector.load %arg4[%c0_103, %c1536] : memref<1x2304xf32, #tpu.memory_space<vmem>>, vector<1x256xf32>
    %c0_104 = arith.constant 0 : index
    %c1536_105 = arith.constant 1536 : index
    %189 = vector.load %arg5[%c0_104, %c1536_105] : memref<1x2304xf32, #tpu.memory_space<vmem>>, vector<1x256xf32>
    %190 = vector.broadcast %182 : vector<1x256xf32> to vector<8x256xf32>
    %191 = arith.subf %175, %190 : vector<8x256xf32>
    %cst_106 = arith.constant 9.99999974E-6 : f32
    %192 = vector.broadcast %cst_106 : f32 to vector<1x256xf32>
    %193 = arith.addf %187, %192 : vector<1x256xf32>
    %194 = math.rsqrt %193 : vector<1x256xf32>
    %195 = vector.broadcast %194 : vector<1x256xf32> to vector<8x256xf32>
    %196 = arith.mulf %191, %195 : vector<8x256xf32>
    %197 = vector.broadcast %188 : vector<1x256xf32> to vector<8x256xf32>
    %198 = arith.mulf %196, %197 : vector<8x256xf32>
    %199 = vector.broadcast %189 : vector<1x256xf32> to vector<8x256xf32>
    %200 = arith.addf %198, %199 : vector<8x256xf32>
    %cst_107 = arith.constant 0.000000e+00 : f32
    %201 = vector.broadcast %cst_107 : f32 to vector<8x256xf32>
    %202 = arith.maximumf %200, %201 : vector<8x256xf32>
    %203 = vector.extract_strided_slice %202 {offsets = [0, 0], sizes = [8, 128], strides = [1, 1]} : vector<8x256xf32> to vector<8x128xf32>
    %204 = arith.addf %154, %203 : vector<8x128xf32>
    %205 = vector.extract_strided_slice %202 {offsets = [0, 128], sizes = [8, 128], strides = [1, 1]} : vector<8x256xf32> to vector<8x128xf32>
    %206 = arith.addf %156, %205 : vector<8x128xf32>
    %c0_i32_108 = arith.constant 0 : i32
    %c0_i32_109 = arith.constant 0 : i32
    %c0_i32_110 = arith.constant 0 : i32
    %c1792_i32_111 = arith.constant 1792 : i32
    %207 = tpu.memref_slice %arg3[%c0_i32_110, %c1792_i32_111] : memref<128x2304xbf16, #tpu.memory_space<any>> -> memref<128x256xbf16, #tpu.memory_space<any>>
    %c0_i32_112 = arith.constant 0 : i32
    %c0_i32_113 = arith.constant 0 : i32
    %208 = tpu.memref_slice %arg7[%c0_i32_108, %c0_i32_112, %c0_i32_113] : memref<2x128x768xbf16, #tpu.memory_space<vmem>> -> memref<1x128x256xbf16, #tpu.memory_space<vmem>>
    %209 = tpu.memref_squeeze %208 : memref<1x128x256xbf16, #tpu.memory_space<vmem>> -> memref<128x256xbf16, #tpu.memory_space<vmem>>
    %210 = tpu.memref_slice %arg8[%c0_i32_109] : memref<2x!tpu.dma_semaphore, #tpu.memory_space<semaphore_mem>> -> memref<1x!tpu.dma_semaphore, #tpu.memory_space<semaphore_mem>>
    %211 = tpu.memref_squeeze %210 : memref<1x!tpu.dma_semaphore, #tpu.memory_space<semaphore_mem>> -> memref<!tpu.dma_semaphore, #tpu.memory_space<semaphore_mem>>
    tpu.wait_dma2 semaphore(%211 : memref<!tpu.dma_semaphore, #tpu.memory_space<semaphore_mem>>) src(%207 : memref<128x256xbf16, #tpu.memory_space<any>>) dst(%209 : memref<128x256xbf16, #tpu.memory_space<vmem>>)
    %c1_i32_114 = arith.constant 1 : i32
    %c1_i32_115 = arith.constant 1 : i32
    %c0_i32_116 = arith.constant 0 : i32
    %c2048_i32 = arith.constant 2048 : i32
    %212 = tpu.memref_slice %arg3[%c0_i32_116, %c2048_i32] : memref<128x2304xbf16, #tpu.memory_space<any>> -> memref<128x128xbf16, #tpu.memory_space<any>>
    %c0_i32_117 = arith.constant 0 : i32
    %c0_i32_118 = arith.constant 0 : i32
    %213 = tpu.memref_slice %arg7[%c1_i32_114, %c0_i32_117, %c0_i32_118] : memref<2x128x768xbf16, #tpu.memory_space<vmem>> -> memref<1x128x128xbf16, #tpu.memory_space<vmem>>
    %214 = tpu.memref_squeeze %213 : memref<1x128x128xbf16, #tpu.memory_space<vmem>> -> memref<128x128xbf16, #tpu.memory_space<vmem>>
    %215 = tpu.memref_slice %arg8[%c1_i32_115] : memref<2x!tpu.dma_semaphore, #tpu.memory_space<semaphore_mem>> -> memref<1x!tpu.dma_semaphore, #tpu.memory_space<semaphore_mem>>
    %216 = tpu.memref_squeeze %215 : memref<1x!tpu.dma_semaphore, #tpu.memory_space<semaphore_mem>> -> memref<!tpu.dma_semaphore, #tpu.memory_space<semaphore_mem>>
    tpu.enqueue_dma source(%212 : memref<128x128xbf16, #tpu.memory_space<any>>) target(%214 : memref<128x128xbf16, #tpu.memory_space<vmem>>) target_semaphore(%216 : memref<!tpu.dma_semaphore, #tpu.memory_space<semaphore_mem>>)
    %c0_119 = arith.constant 0 : index
    %c0_120 = arith.constant 0 : index
    %c0_121 = arith.constant 0 : index
    %217 = vector.load %arg7[%c0_119, %c0_120, %c0_121] : memref<2x128x768xbf16, #tpu.memory_space<vmem>>, vector<1x128x256xbf16>
    %218 = vector.shape_cast %217 : vector<1x128x256xbf16> to vector<128x256xbf16>
    %cst_122 = arith.constant dense<0.000000e+00> : vector<8x256xf32>
    %219 = tpu.matmul %162, %218, %cst_122 {dimension_numbers = #tpu.dot_dimension_numbers<[1], [0], [0], [1], [0, 0, 1, 1], [], []>} : vector<8x128xbf16>, vector<128x256xbf16>, vector<8x256xf32> -> vector<8x256xf32>
    %220 = arith.mulf %219, %219 : vector<8x256xf32>
    %221 = tpu.concatenate %219, %220 in 1 : vector<8x256xf32>, vector<8x256xf32> -> vector<8x512xf32>
    %cst_123 = arith.constant dense<0.000000e+00> : vector<512xf32>
    %222 = vector.multi_reduction <add>, %221, %cst_123 [0] : vector<8x512xf32> to vector<512xf32>
    %223 = vector.shape_cast %222 : vector<512xf32> to vector<1x512xf32>
    %cst_124 = arith.constant 1.250000e-01 : f32
    %224 = vector.broadcast %cst_124 : f32 to vector<1x512xf32>
    %225 = arith.mulf %223, %224 : vector<1x512xf32>
    %226 = vector.extract_strided_slice %225 {offsets = [0, 0], sizes = [1, 256], strides = [1, 1]} : vector<1x512xf32> to vector<1x256xf32>
    %227 = vector.extract_strided_slice %225 {offsets = [0, 256], sizes = [1, 256], strides = [1, 1]} : vector<1x512xf32> to vector<1x256xf32>
    %228 = arith.mulf %226, %226 : vector<1x256xf32>
    %229 = arith.subf %227, %228 : vector<1x256xf32>
    %cst_125 = arith.constant 0.000000e+00 : f32
    %230 = vector.broadcast %cst_125 : f32 to vector<1x256xf32>
    %231 = arith.maximumf %229, %230 : vector<1x256xf32>
    %c0_126 = arith.constant 0 : index
    %c1792 = arith.constant 1792 : index
    %232 = vector.load %arg4[%c0_126, %c1792] : memref<1x2304xf32, #tpu.memory_space<vmem>>, vector<1x256xf32>
    %c0_127 = arith.constant 0 : index
    %c1792_128 = arith.constant 1792 : index
    %233 = vector.load %arg5[%c0_127, %c1792_128] : memref<1x2304xf32, #tpu.memory_space<vmem>>, vector<1x256xf32>
    %234 = vector.broadcast %226 : vector<1x256xf32> to vector<8x256xf32>
    %235 = arith.subf %219, %234 : vector<8x256xf32>
    %cst_129 = arith.constant 9.99999974E-6 : f32
    %236 = vector.broadcast %cst_129 : f32 to vector<1x256xf32>
    %237 = arith.addf %231, %236 : vector<1x256xf32>
    %238 = math.rsqrt %237 : vector<1x256xf32>
    %239 = vector.broadcast %238 : vector<1x256xf32> to vector<8x256xf32>
    %240 = arith.mulf %235, %239 : vector<8x256xf32>
    %241 = vector.broadcast %232 : vector<1x256xf32> to vector<8x256xf32>
    %242 = arith.mulf %240, %241 : vector<8x256xf32>
    %243 = vector.broadcast %233 : vector<1x256xf32> to vector<8x256xf32>
    %244 = arith.addf %242, %243 : vector<8x256xf32>
    %cst_130 = arith.constant 0.000000e+00 : f32
    %245 = vector.broadcast %cst_130 : f32 to vector<8x256xf32>
    %246 = arith.maximumf %244, %245 : vector<8x256xf32>
    %247 = vector.extract_strided_slice %246 {offsets = [0, 0], sizes = [8, 128], strides = [1, 1]} : vector<8x256xf32> to vector<8x128xf32>
    %248 = arith.addf %204, %247 : vector<8x128xf32>
    %249 = vector.extract_strided_slice %246 {offsets = [0, 128], sizes = [8, 128], strides = [1, 1]} : vector<8x256xf32> to vector<8x128xf32>
    %250 = arith.addf %206, %249 : vector<8x128xf32>
    %c1_131 = arith.constant 1 : index
    %c0_132 = arith.constant 0 : index
    %c0_133 = arith.constant 0 : index
    %251 = vector.load %arg6[%c1_131, %c0_132, %c0_133] : memref<3x8x128xf32, #tpu.memory_space<vmem>>, vector<1x8x128xf32>
    %252 = vector.shape_cast %251 : vector<1x8x128xf32> to vector<8x128xf32>
    %253 = vector.shape_cast %248 : vector<8x128xf32> to vector<1x8x128xf32>
    tpu.vector_store %arg6[%c1_131, %c0_132, %c0_133], %253 {strides = array<i32>} : memref<3x8x128xf32, #tpu.memory_space<vmem>>, vector<1x8x128xf32>,
    %254 = arith.truncf %248 : vector<8x128xf32> to vector<8x128xbf16>
    %cst_134 = arith.constant dense<0.000000e+00> : vector<8x128xf32>
    %255 = tpu.matmul %5, %254, %cst_134 {dimension_numbers = #tpu.dot_dimension_numbers<[1], [0], [0], [1], [0, 0, 1, 1], [], []>} : vector<8x8xbf16>, vector<8x128xbf16>, vector<8x128xf32> -> vector<8x128xf32>
    %256 = arith.truncf %255 : vector<8x128xf32> to vector<8x128xbf16>
    %c1_i32_135 = arith.constant 1 : i32
    %c1_i32_136 = arith.constant 1 : i32
    %c0_i32_137 = arith.constant 0 : i32
    %c2048_i32_138 = arith.constant 2048 : i32
    %257 = tpu.memref_slice %arg3[%c0_i32_137, %c2048_i32_138] : memref<128x2304xbf16, #tpu.memory_space<any>> -> memref<128x128xbf16, #tpu.memory_space<any>>
    %c0_i32_139 = arith.constant 0 : i32
    %c0_i32_140 = arith.constant 0 : i32
    %258 = tpu.memref_slice %arg7[%c1_i32_135, %c0_i32_139, %c0_i32_140] : memref<2x128x768xbf16, #tpu.memory_space<vmem>> -> memref<1x128x128xbf16, #tpu.memory_space<vmem>>
    %259 = tpu.memref_squeeze %258 : memref<1x128x128xbf16, #tpu.memory_space<vmem>> -> memref<128x128xbf16, #tpu.memory_space<vmem>>
    %260 = tpu.memref_slice %arg8[%c1_i32_136] : memref<2x!tpu.dma_semaphore, #tpu.memory_space<semaphore_mem>> -> memref<1x!tpu.dma_semaphore, #tpu.memory_space<semaphore_mem>>
    %261 = tpu.memref_squeeze %260 : memref<1x!tpu.dma_semaphore, #tpu.memory_space<semaphore_mem>> -> memref<!tpu.dma_semaphore, #tpu.memory_space<semaphore_mem>>
    tpu.wait_dma2 semaphore(%261 : memref<!tpu.dma_semaphore, #tpu.memory_space<semaphore_mem>>) src(%257 : memref<128x128xbf16, #tpu.memory_space<any>>) dst(%259 : memref<128x128xbf16, #tpu.memory_space<vmem>>)
    %c0_i32_141 = arith.constant 0 : i32
    %c0_i32_142 = arith.constant 0 : i32
    %c0_i32_143 = arith.constant 0 : i32
    %c2176_i32 = arith.constant 2176 : i32
    %262 = tpu.memref_slice %arg3[%c0_i32_143, %c2176_i32] : memref<128x2304xbf16, #tpu.memory_space<any>> -> memref<128x128xbf16, #tpu.memory_space<any>>
    %c0_i32_144 = arith.constant 0 : i32
    %c0_i32_145 = arith.constant 0 : i32
    %263 = tpu.memref_slice %arg7[%c0_i32_141, %c0_i32_144, %c0_i32_145] : memref<2x128x768xbf16, #tpu.memory_space<vmem>> -> memref<1x128x128xbf16, #tpu.memory_space<vmem>>
    %264 = tpu.memref_squeeze %263 : memref<1x128x128xbf16, #tpu.memory_space<vmem>> -> memref<128x128xbf16, #tpu.memory_space<vmem>>
    %265 = tpu.memref_slice %arg8[%c0_i32_142] : memref<2x!tpu.dma_semaphore, #tpu.memory_space<semaphore_mem>> -> memref<1x!tpu.dma_semaphore, #tpu.memory_space<semaphore_mem>>
    %266 = tpu.memref_squeeze %265 : memref<1x!tpu.dma_semaphore, #tpu.memory_space<semaphore_mem>> -> memref<!tpu.dma_semaphore, #tpu.memory_space<semaphore_mem>>
    tpu.enqueue_dma source(%262 : memref<128x128xbf16, #tpu.memory_space<any>>) target(%264 : memref<128x128xbf16, #tpu.memory_space<vmem>>) target_semaphore(%266 : memref<!tpu.dma_semaphore, #tpu.memory_space<semaphore_mem>>)
    %c1_146 = arith.constant 1 : index
    %c0_147 = arith.constant 0 : index
    %c0_148 = arith.constant 0 : index
    %267 = vector.load %arg7[%c1_146, %c0_147, %c0_148] : memref<2x128x768xbf16, #tpu.memory_space<vmem>>, vector<1x128x128xbf16>
    %268 = vector.shape_cast %267 : vector<1x128x128xbf16> to vector<128x128xbf16>
    %cst_149 = arith.constant dense<0.000000e+00> : vector<8x128xf32>
    %269 = tpu.matmul %254, %268, %cst_149 {dimension_numbers = #tpu.dot_dimension_numbers<[1], [0], [0], [1], [0, 0, 1, 1], [], []>} : vector<8x128xbf16>, vector<128x128xbf16>, vector<8x128xf32> -> vector<8x128xf32>
    %270 = arith.mulf %269, %269 : vector<8x128xf32>
    %271 = tpu.concatenate %269, %270 in 1 : vector<8x128xf32>, vector<8x128xf32> -> vector<8x256xf32>
    %cst_150 = arith.constant dense<0.000000e+00> : vector<256xf32>
    %272 = vector.multi_reduction <add>, %271, %cst_150 [0] : vector<8x256xf32> to vector<256xf32>
    %273 = vector.shape_cast %272 : vector<256xf32> to vector<1x256xf32>
    %cst_151 = arith.constant 1.250000e-01 : f32
    %274 = vector.broadcast %cst_151 : f32 to vector<1x256xf32>
    %275 = arith.mulf %273, %274 : vector<1x256xf32>
    %276 = vector.extract_strided_slice %275 {offsets = [0, 0], sizes = [1, 128], strides = [1, 1]} : vector<1x256xf32> to vector<1x128xf32>
    %277 = vector.extract_strided_slice %275 {offsets = [0, 128], sizes = [1, 128], strides = [1, 1]} : vector<1x256xf32> to vector<1x128xf32>
    %278 = arith.mulf %276, %276 : vector<1x128xf32>
    %279 = arith.subf %277, %278 : vector<1x128xf32>
    %cst_152 = arith.constant 0.000000e+00 : f32
    %280 = vector.broadcast %cst_152 : f32 to vector<1x128xf32>
    %281 = arith.maximumf %279, %280 : vector<1x128xf32>
    %c0_153 = arith.constant 0 : index
    %c2048 = arith.constant 2048 : index
    %282 = vector.load %arg4[%c0_153, %c2048] : memref<1x2304xf32, #tpu.memory_space<vmem>>, vector<1x128xf32>
    %c0_154 = arith.constant 0 : index
    %c2048_155 = arith.constant 2048 : index
    %283 = vector.load %arg5[%c0_154, %c2048_155] : memref<1x2304xf32, #tpu.memory_space<vmem>>, vector<1x128xf32>
    %284 = vector.broadcast %276 : vector<1x128xf32> to vector<8x128xf32>
    %285 = arith.subf %269, %284 : vector<8x128xf32>
    %cst_156 = arith.constant 9.99999974E-6 : f32
    %286 = vector.broadcast %cst_156 : f32 to vector<1x128xf32>
    %287 = arith.addf %281, %286 : vector<1x128xf32>
    %288 = math.rsqrt %287 : vector<1x128xf32>
    %289 = vector.broadcast %288 : vector<1x128xf32> to vector<8x128xf32>
    %290 = arith.mulf %285, %289 : vector<8x128xf32>
    %291 = vector.broadcast %282 : vector<1x128xf32> to vector<8x128xf32>
    %292 = arith.mulf %290, %291 : vector<8x128xf32>
    %293 = vector.broadcast %283 : vector<1x128xf32> to vector<8x128xf32>
    %294 = arith.addf %292, %293 : vector<8x128xf32>
    %cst_157 = arith.constant 0.000000e+00 : f32
    %295 = vector.broadcast %cst_157 : f32 to vector<8x128xf32>
    %296 = arith.maximumf %294, %295 : vector<8x128xf32>
    %297 = arith.addf %250, %296 : vector<8x128xf32>
    %c0_i32_158 = arith.constant 0 : i32
    %c0_i32_159 = arith.constant 0 : i32
    %c0_i32_160 = arith.constant 0 : i32
    %c2176_i32_161 = arith.constant 2176 : i32
    %298 = tpu.memref_slice %arg3[%c0_i32_160, %c2176_i32_161] : memref<128x2304xbf16, #tpu.memory_space<any>> -> memref<128x128xbf16, #tpu.memory_space<any>>
    %c0_i32_162 = arith.constant 0 : i32
    %c0_i32_163 = arith.constant 0 : i32
    %299 = tpu.memref_slice %arg7[%c0_i32_158, %c0_i32_162, %c0_i32_163] : memref<2x128x768xbf16, #tpu.memory_space<vmem>> -> memref<1x128x128xbf16, #tpu.memory_space<vmem>>
    %300 = tpu.memref_squeeze %299 : memref<1x128x128xbf16, #tpu.memory_space<vmem>> -> memref<128x128xbf16, #tpu.memory_space<vmem>>
    %301 = tpu.memref_slice %arg8[%c0_i32_159] : memref<2x!tpu.dma_semaphore, #tpu.memory_space<semaphore_mem>> -> memref<1x!tpu.dma_semaphore, #tpu.memory_space<semaphore_mem>>
    %302 = tpu.memref_squeeze %301 : memref<1x!tpu.dma_semaphore, #tpu.memory_space<semaphore_mem>> -> memref<!tpu.dma_semaphore, #tpu.memory_space<semaphore_mem>>
    tpu.wait_dma2 semaphore(%302 : memref<!tpu.dma_semaphore, #tpu.memory_space<semaphore_mem>>) src(%298 : memref<128x128xbf16, #tpu.memory_space<any>>) dst(%300 : memref<128x128xbf16, #tpu.memory_space<vmem>>)
    %c0_164 = arith.constant 0 : index
    %c0_165 = arith.constant 0 : index
    %c0_166 = arith.constant 0 : index
    %303 = vector.load %arg7[%c0_164, %c0_165, %c0_166] : memref<2x128x768xbf16, #tpu.memory_space<vmem>>, vector<1x128x128xbf16>
    %304 = vector.shape_cast %303 : vector<1x128x128xbf16> to vector<128x128xbf16>
    %cst_167 = arith.constant dense<0.000000e+00> : vector<8x128xf32>
    %305 = tpu.matmul %256, %304, %cst_167 {dimension_numbers = #tpu.dot_dimension_numbers<[1], [0], [0], [1], [0, 0, 1, 1], [], []>} : vector<8x128xbf16>, vector<128x128xbf16>, vector<8x128xf32> -> vector<8x128xf32>
    %306 = arith.mulf %305, %305 : vector<8x128xf32>
    %307 = tpu.concatenate %305, %306 in 1 : vector<8x128xf32>, vector<8x128xf32> -> vector<8x256xf32>
    %cst_168 = arith.constant dense<0.000000e+00> : vector<256xf32>
    %308 = vector.multi_reduction <add>, %307, %cst_168 [0] : vector<8x256xf32> to vector<256xf32>
    %309 = vector.shape_cast %308 : vector<256xf32> to vector<1x256xf32>
    %cst_169 = arith.constant 1.250000e-01 : f32
    %310 = vector.broadcast %cst_169 : f32 to vector<1x256xf32>
    %311 = arith.mulf %309, %310 : vector<1x256xf32>
    %312 = vector.extract_strided_slice %311 {offsets = [0, 0], sizes = [1, 128], strides = [1, 1]} : vector<1x256xf32> to vector<1x128xf32>
    %313 = vector.extract_strided_slice %311 {offsets = [0, 128], sizes = [1, 128], strides = [1, 1]} : vector<1x256xf32> to vector<1x128xf32>
    %314 = arith.mulf %312, %312 : vector<1x128xf32>
    %315 = arith.subf %313, %314 : vector<1x128xf32>
    %cst_170 = arith.constant 0.000000e+00 : f32
    %316 = vector.broadcast %cst_170 : f32 to vector<1x128xf32>
    %317 = arith.maximumf %315, %316 : vector<1x128xf32>
    %c0_171 = arith.constant 0 : index
    %c2176 = arith.constant 2176 : index
    %318 = vector.load %arg4[%c0_171, %c2176] : memref<1x2304xf32, #tpu.memory_space<vmem>>, vector<1x128xf32>
    %c0_172 = arith.constant 0 : index
    %c2176_173 = arith.constant 2176 : index
    %319 = vector.load %arg5[%c0_172, %c2176_173] : memref<1x2304xf32, #tpu.memory_space<vmem>>, vector<1x128xf32>
    %320 = vector.broadcast %312 : vector<1x128xf32> to vector<8x128xf32>
    %321 = arith.subf %305, %320 : vector<8x128xf32>
    %cst_174 = arith.constant 9.99999974E-6 : f32
    %322 = vector.broadcast %cst_174 : f32 to vector<1x128xf32>
    %323 = arith.addf %317, %322 : vector<1x128xf32>
    %324 = math.rsqrt %323 : vector<1x128xf32>
    %325 = vector.broadcast %324 : vector<1x128xf32> to vector<8x128xf32>
    %326 = arith.mulf %321, %325 : vector<8x128xf32>
    %327 = vector.broadcast %318 : vector<1x128xf32> to vector<8x128xf32>
    %328 = arith.mulf %326, %327 : vector<8x128xf32>
    %329 = vector.broadcast %319 : vector<1x128xf32> to vector<8x128xf32>
    %330 = arith.addf %328, %329 : vector<8x128xf32>
    %cst_175 = arith.constant 0.000000e+00 : f32
    %331 = vector.broadcast %cst_175 : f32 to vector<8x128xf32>
    %332 = arith.maximumf %330, %331 : vector<8x128xf32>
    %333 = arith.addf %297, %332 : vector<8x128xf32>
    %c2 = arith.constant 2 : index
    %c0_176 = arith.constant 0 : index
    %c0_177 = arith.constant 0 : index
    %334 = vector.load %arg6[%c2, %c0_176, %c0_177] : memref<3x8x128xf32, #tpu.memory_space<vmem>>, vector<1x8x128xf32>
    %335 = vector.shape_cast %334 : vector<1x8x128xf32> to vector<8x128xf32>
    %336 = vector.shape_cast %333 : vector<8x128xf32> to vector<1x8x128xf32>
    tpu.vector_store %arg6[%c2, %c0_176, %c0_177], %336 {strides = array<i32>} : memref<3x8x128xf32, #tpu.memory_space<vmem>>, vector<1x8x128xf32>,
    return
  }
}

</mosaic_0001>

<bundles_post_ra>
// kernel: tpu_custom_call.1
= control target key start
LH: loop header
LB: loop body
LE: loop exit
PB: predicated region body
PF: predicated region fallthrough
CT: control target
= control target key end

     0   :  { %11 = vsyncpa [#allocation5], 0  ;;  %s3681_s0 = inlined_call_operand.hbm [shape: bf16[8,8], index: 0, kind: input, shape index: {}]   ;;  %s3682_s1 = inlined_call_operand.hbm [shape: bf16[8,128], index: 1, kind: input, shape index: {}]   ;;  %s3683_s2 = inlined_call_operand.hbm [shape: bf16[8,128], index: 2, kind: input, shape index: {}]   ;;  %s3684_s3 = inlined_call_operand.hbm [shape: bf16[128,2304], index: 3, kind: input, shape index: {}]   ;;  %s3685_s4 = inlined_call_operand.hbm [shape: f32[1,2304], index: 4, kind: input, shape index: {}]   ;;  %s3686_s5 = inlined_call_operand.hbm [shape: f32[1,2304], index: 5, kind: input, shape index: {}]   ;;  %s3687_s6 = inlined_call_operand.hbm [shape: f32[3,8,128], index: 6, kind: output, shape index: {}]  }
   0x1   :  { %12 = vsyncpa [#allocation8], 0 }
   0x2   :  { %13 = vsyncpa [#allocation11], 0 }
   0x3   :  { %14 = vsyncpa [#allocation6], 0  ;;  %s3220_s21 = smov [#allocation7]   ;;  %s3221_s23 = smov [#allocation10]  }
   0x4   :  { %s31_s22 = sshll.u32 %s3220_s21, 4  ;;  %s51_s24 = sshll.u32 %s3221_s23, 4  ;;  %s32_s22 = int_to_ptr.vmem [resolvable:$true] %s31_s22  ;;  %s52_s24 = int_to_ptr.vmem [resolvable:$true] %s51_s24 }
   0x5   :  { %s2928_s25 = scalar_lea.vmem %s32_s22, 64  ;;  %p2933_p1 = scmp.lt.s32.totalorder %s32_s22, %s32_s22 }
   0x6   :  { %p2929_p0 = scmp.ne.s32.totalorder %s32_s22, %s2928_s25  ;;  %p2934_p2 = scmp.lt.s32.totalorder %s2928_s25, %s2928_s25 }
   0x8   :  { %p2935_p3 = por %p2934_p2, %p2933_p1 }
   0xa   :  { %p2936_p4 = pnand %p2935_p3, %p2929_p0 }
   0xc   :  { %2939 = shalt.err (!%p2936_p4)
}
   0xd   :  { %34 = dma.hbm_to_vmem [thread:$0]  %s3682_s1, 64, %s32_s22, [#allocation8]  }
   0xe   :  { %s2948_s28 = scalar_lea.vmem %s52_s24, 288  ;;  %p2953_p6 = scmp.lt.s32.totalorder %s52_s24, %s52_s24 }
   0xf   :  { %p2949_p5 = scmp.ne.s32.totalorder %s52_s24, %s2948_s28  ;;  %p2954_p7 = scmp.lt.s32.totalorder %s2948_s28, %s2948_s28 }
  0x11   :  { %p2955_p8 = por %p2954_p7, %p2953_p6 }
  0x13   :  { %p2956_p9 = pnand %p2955_p8, %p2949_p5 }
  0x15   :  { %2959 = shalt.err (!%p2956_p9)
}
  0x16   :  { %54 = dma.hbm_to_vmem [thread:$0]  %s3685_s4, 288, %s52_s24, [#allocation11]  }
  0x17   :  { %s3222_s7 = smov [#allocation4]   ;;  %s3223_s9 = smov [#allocation9]  }
  0x18   :  { %s21_s8 = sshll.u32 %s3222_s7, 4  ;;  %s41_s10 = sshll.u32 %s3223_s9, 4  ;;  %s22_s8 = int_to_ptr.vmem [resolvable:$true] %s21_s8  ;;  %s42_s10 = int_to_ptr.vmem [resolvable:$true] %s41_s10 }
  0x19   :  { %s2968_s11 = scalar_lea.vmem %s22_s8, 64  ;;  %p2973_p11 = scmp.lt.s32.totalorder %s22_s8, %s22_s8 }
  0x1a   :  { %p2969_p10 = scmp.ne.s32.totalorder %s22_s8, %s2968_s11  ;;  %p2974_p12 = scmp.lt.s32.totalorder %s2968_s11, %s2968_s11 }
  0x1c   :  { %p2975_p13 = por %p2974_p12, %p2973_p11 }
  0x1e   :  { %p2976_p0 = pnand %p2975_p13, %p2969_p10 }
  0x20   :  { %2979 = shalt.err (!%p2976_p0)
}
  0x21   :  { %24 = dma.hbm_to_vmem [thread:$0]  %s3681_s0, 64, %s22_s8, [#allocation5]  }
  0x22   :  { %s2988_s13 = scalar_lea.vmem %s42_s10, 64  ;;  %p2993_p2 = scmp.lt.s32.totalorder %s42_s10, %s42_s10 }
  0x23   :  { %p2989_p1 = scmp.ne.s32.totalorder %s42_s10, %s2988_s13  ;;  %p2994_p3 = scmp.lt.s32.totalorder %s2988_s13, %s2988_s13 }
  0x25   :  { %p2995_p4 = por %p2994_p3, %p2993_p2 }
  0x27   :  { %p2996_p5 = pnand %p2995_p4, %p2989_p1 }
  0x29   :  { %2999 = shalt.err (!%p2996_p5)
}
  0x2a   :  { %44 = dma.hbm_to_vmem [thread:$0]  %s3683_s2, 64, %s42_s10, [#allocation8]  }
  0x2b   :  { %s3224_s15 = smov [#allocation12]  }
  0x2c   :  { %s61_s16 = sshll.u32 %s3224_s15, 4  ;;  %s62_s16 = int_to_ptr.vmem [resolvable:$true] %s61_s16 }
  0x2d   :  { %s3008_s17 = scalar_lea.vmem %s62_s16, 288  ;;  %p3013_p7 = scmp.lt.s32.totalorder %s62_s16, %s62_s16 }
  0x2e   :  { %p3009_p6 = scmp.ne.s32.totalorder %s62_s16, %s3008_s17  ;;  %p3014_p8 = scmp.lt.s32.totalorder %s3008_s17, %s3008_s17 }
  0x30   :  { %p3015_p9 = por %p3014_p8, %p3013_p7 }
  0x32   :  { %p3016_p10 = pnand %p3015_p9, %p3009_p6 }
  0x34   :  { %3019 = shalt.err (!%p3016_p10)
}
  0x35   :  { %64 = dma.hbm_to_vmem [thread:$0]  %s3686_s5, 288, %s62_s16, [#allocation11]  }
  0x36   :  { %3198 = dma.done.wait [#allocation5], 64  }
  0x37   :  { %3199 = vsyncadd [#allocation5], 4294967232 }
  0x38   :  { %3200 = dma.done.wait [#allocation8], 128  }
  0x39   :  { %3201 = vsyncadd [#allocation8], 4294967168 }
  0x3a   :  { %3202 = dma.done.wait [#allocation11], 576  }
  0x3b   :  { %3203 = vsyncadd [#allocation11], 4294966720  ;;  %v3225_v0 = vmov 0.0   ;;  %vm3226_vm0 = vmmov 0   ;;  %vm93_vm1 = vcmask 1043456   ;;  %vm89_vm2 = vcmask 64512  }
  0x3c   :  { %2568 = vmatprep.subr.bf16.mxu0 %v3225_v0  ;;  %2570 = vmatprep.mubr.msk.bf16.mxu0 %vm3226_vm0, %v3225_v0  ;;  %v3291_v1 = vld [vmem:[#allocation9] sm:$0xf]  ;;  %v3293_v2 = vld [vmem:[#allocation7] sm:$0xf]  ;;  %v3297_v4 = vld [vmem:[#allocation4] sm:$0xf] }
  0x3d   :  { %v95_v3 = vsel %vm93_vm1, %v3293_v2, 0  ;;  %s3227_s2 = smov [#allocation2]  }
  0x3e   :  { %2569 = vmatpush3.bf16.msra.mxu0 %v95_v3  ;;  %s82_s5 = sshll.u32 %s3227_s2, 4  ;;  %s3301_s5 = int_to_ptr.vmem [resolvable:$true] %s82_s5 }
  0x3f   :  { %s3028_s19 = scalar_lea.vmem %s3301_s5, 6144  ;;  %s3306_s20 = scalar_lea.vmem %s3301_s5, 12288 }
  0x40   :  { %p3029_p11 = scmp.ne.s32.totalorder %s3301_s5, %s3028_s19  ;;  %p3033_p12 = scmp.lt.s32.totalorder %s3301_s5, %s3301_s5 }
  0x41   :  { %2571 = vmatmul.mubr.msk.bf16.vlgmr.msra.gmra.mxu0 %vm89_vm2, %v3297_v4  ;;  %p3034_p13 = scmp.lt.s32.totalorder %s3306_s20, %s3028_s19 }
  0x43   :  { %p3035_p0 = por %p3034_p13, %p3033_p12 }
  0x45   :  { %p3036_p1 = pnand %p3035_p0, %p3029_p11 }
  0x47   :  { %3039 = shalt.err (!%p3036_p1)  }
  0x48   :  { %s3228_s21 = smov 1152   ;;  %s3229_s22 = smov 384  }
  0x49   :  { %s3230_s23 = smov 24  }
  0x4a   :  { %85 = dma.hbm_to_vmem [thread:$0]  %s3684_s3, 6144, %s3301_s5, [#allocation3], %s3228_s21, %s3229_s22, %s3230_s23 }
 0x101   :  { %v131_v5 = vpop.f32.mrf.mxu0 }
 0x102   :  { %v3320_v6 = vpack.c.bf16 %v131_v5, %v131_v5 }
 0x103   :  { %v2572_v7 = vpop.f32.mrf.mxu0 }
 0x105   :  { %v134_v8 = vpop.f32.mrf.mxu0 }
 0x107   :  { %v2573_v9 = vpop.f32.mrf.mxu0 }
 0x108   :  { %3204 = dma.done.wait [#allocation3], 6144 }
 0x109   :  { %3205 = vsyncadd [#allocation3], 4294961152  ;;  %s142_s28 = scalar_lea.hbm %s3684_s3, 384  ;;  %s3231_s29 = smov [#allocation2 + $0x180]   ;;  %v3232_v10 = vmov 0  }
 0x10a   :  { %s146_s30 = sshll.u32 %s3231_s29, 4  ;;  %470 = vmatprep.mubr.bf16.mxu1 %v3232_v10  ;;  %511 = vmatprep.mubr.bf16.mxu0 %v3232_v10  ;;  %s3327_s30 = int_to_ptr.vmem [resolvable:$true] %s146_s30 }
 0x10b   :  { %s3050_s7 = scalar_lea.vmem %s3327_s30, 3072  ;;  %p3055_p3 = scmp.lt.s32.totalorder %s3327_s30, %s3301_s5 }
 0x10c   :  { %p3051_p2 = scmp.ne.s32.totalorder %s3327_s30, %s3050_s7  ;;  %p3056_p4 = scmp.lt.s32.totalorder %s3306_s20, %s3050_s7 }
 0x10e   :  { %p3057_p5 = por %p3056_p4, %p3055_p3 }
 0x110   :  { %p3058_p6 = pnand %p3057_p5, %p3051_p2 }
 0x112   :  { %3061 = shalt.err (!%p3058_p6)  }
 0x113   :  { %s3233_s8 = smov 12  }
 0x114   :  { %149 = dma.hbm_to_vmem [thread:$0]  %s142_s28, 3072, %s3327_s30, [#allocation3 + $0x1], %s3228_s21, %s3229_s22, %s3233_s8 }
 0x115   :  { %v2684_v11 = vld [vmem:[#allocation2 + $0x154] ss:$24 sps:$4 sm:$0xff]   ;;  %v2688_v13 = vld [vmem:[#allocation2 + $0x150] ss:$24 sps:$4 sm:$0xff]   ;;  %v2690_v15 = vld [vmem:[#allocation2 + $0x124] ss:$24 sps:$4 sm:$0xff]  }
 0x116   :  { %v2686_v12 = vld [vmem:[#allocation2 + $0x15c] ss:$24 sps:$4 sm:$0xff]   ;;  %438 = vmatprep.subr.bf16.mxu1 %v2684_v11  ;;  %v2689_v14 = vld [vmem:[#allocation2 + $0x158] ss:$24 sps:$4 sm:$0xff]   ;;  %v2692_v16 = vld [vmem:[#allocation2 + $0x12c] ss:$24 sps:$4 sm:$0xff]  }
 0x117   :  { %479 = vmatprep.subr.bf16.mxu0 %v2686_v12  ;;  %439 = vmatpush1.bf16.msra.mxu1 %v2688_v13  ;;  %v2694_v17 = vld [vmem:[#allocation2 + $0x120] ss:$24 sps:$4 sm:$0xff]   ;;  %v2696_v19 = vld [vmem:[#allocation2 + $0xf4] ss:$24 sps:$4 sm:$0xff]   ;;  %v2700_v21 = vld [vmem:[#allocation2 + $0xf0] ss:$24 sps:$4 sm:$0xff]  }
 0x118   :  { %480 = vmatpush1.bf16.msra.mxu0 %v2689_v14  ;;  %440 = vmatprep.subr.bf16.mxu1 %v2690_v15  ;;  %v2695_v18 = vld [vmem:[#allocation2 + $0x128] ss:$24 sps:$4 sm:$0xff]   ;;  %v2698_v20 = vld [vmem:[#allocation2 + $0xfc] ss:$24 sps:$4 sm:$0xff]   ;;  %v2701_v22 = vld [vmem:[#allocation2 + $0xf8] ss:$24 sps:$4 sm:$0xff]  }
 0x119   :  { %481 = vmatprep.subr.bf16.mxu0 %v2692_v16  ;;  %v2702_v23 = vld [vmem:[#allocation2 + $0xc4] ss:$24 sps:$4 sm:$0xff]   ;;  %v2706_v25 = vld [vmem:[#allocation2 + $0xc0] ss:$24 sps:$4 sm:$0xff]   ;;  %v2708_v27 = vld [vmem:[#allocation2 + $0x94] ss:$24 sps:$4 sm:$0xff]  }
 0x11a   :  { %v2704_v24 = vld [vmem:[#allocation2 + $0xcc] ss:$24 sps:$4 sm:$0xff]   ;;  %v2707_v26 = vld [vmem:[#allocation2 + $0xc8] ss:$24 sps:$4 sm:$0xff]   ;;  %v2710_v28 = vld [vmem:[#allocation2 + $0x9c] ss:$24 sps:$4 sm:$0xff]  }
 0x11b   :  { %441 = vmatpush1.bf16.msra.mxu1 %v2694_v17  ;;  %v2712_v29 = vld [vmem:[#allocation2 + $0x90] ss:$24 sps:$4 sm:$0xff]   ;;  %v2714_v31 = vld [vmem:[#allocation2 + $0x64] ss:$24 sps:$4 sm:$0xff]   ;;  %v2718_v33 = vld [vmem:[#allocation2 + $0x60] ss:$24 sps:$4 sm:$0xff]  }
 0x11c   :  { %482 = vmatpush1.bf16.msra.mxu0 %v2695_v18  ;;  %442 = vmatprep.subr.bf16.mxu1 %v2696_v19  ;;  %v2713_v30 = vld [vmem:[#allocation2 + $0x98] ss:$24 sps:$4 sm:$0xff]   ;;  %v2716_v32 = vld [vmem:[#allocation2 + $0x6c] ss:$24 sps:$4 sm:$0xff]   ;;  %v2719_v34 = vld [vmem:[#allocation2 + $0x68] ss:$24 sps:$4 sm:$0xff]  }
 0x11d   :  { %483 = vmatprep.subr.bf16.mxu0 %v2698_v20  ;;  %v2720_v35 = vld [vmem:[#allocation2 + $0x34] ss:$24 sps:$4 sm:$0xff]   ;;  %v2724_v37 = vld [vmem:[#allocation2 + $0x30] ss:$24 sps:$4 sm:$0xff]   ;;  %v2726_v39 = vld [vmem:[#allocation2 + $0x4] ss:$24 sps:$4 sm:$0xff]  }
 0x11e   :  { %v2722_v36 = vld [vmem:[#allocation2 + $0x3c] ss:$24 sps:$4 sm:$0xff]   ;;  %v2725_v38 = vld [vmem:[#allocation2 + $0x38] ss:$24 sps:$4 sm:$0xff]   ;;  %v2728_v40 = vld [vmem:[#allocation2 + $0xc] ss:$24 sps:$4 sm:$0xff]  }
 0x11f   :  { %443 = vmatpush1.bf16.msra.mxu1 %v2700_v21  ;;  %v2730_v41 = vld [vmem:[#allocation2] ss:$24 sps:$4 sm:$0xff]   ;;  %v2734_v43 = vld [vmem:[#allocation2 + $0x164] ss:$24 sps:$4 sm:$0xff]   ;;  %v2737_v45 = vld [vmem:[#allocation2 + $0x134] ss:$24 sps:$4 sm:$0xff]  }
 0x120   :  { %484 = vmatpush1.bf16.msra.mxu0 %v2701_v22  ;;  %444 = vmatprep.subr.bf16.mxu1 %v2702_v23  ;;  %v2731_v42 = vld [vmem:[#allocation2 + $0x8] ss:$24 sps:$4 sm:$0xff]   ;;  %v2740_v47 = vld [vmem:[#allocation2 + $0x104] ss:$24 sps:$4 sm:$0xff]   ;;  %v2743_v49 = vld [vmem:[#allocation2 + $0xd4] ss:$24 sps:$4 sm:$0xff]  }
 0x121   :  { %485 = vmatprep.subr.bf16.mxu0 %v2704_v24  ;;  %v2732_v44 = vld [vmem:[#allocation2 + $0x160] ss:$24 sps:$4 sm:$0xff]   ;;  %v2735_v46 = vld [vmem:[#allocation2 + $0x130] ss:$24 sps:$4 sm:$0xff]   ;;  %v2746_v51 = vld [vmem:[#allocation2 + $0xa4] ss:$24 sps:$4 sm:$0xff]  }
 0x122   :  { %v2738_v48 = vld [vmem:[#allocation2 + $0x100] ss:$24 sps:$4 sm:$0xff]   ;;  %v2741_v50 = vld [vmem:[#allocation2 + $0xd0] ss:$24 sps:$4 sm:$0xff]   ;;  %v2749_v53 = vld [vmem:[#allocation2 + $0x74] ss:$24 sps:$4 sm:$0xff]  }
 0x123   :  { %445 = vmatpush1.bf16.msra.mxu1 %v2706_v25  ;;  %v2744_v52 = vld [vmem:[#allocation2 + $0xa0] ss:$24 sps:$4 sm:$0xff]   ;;  %v2747_v54 = vld [vmem:[#allocation2 + $0x70] ss:$24 sps:$4 sm:$0xff]   ;;  %v2752_v55 = vld [vmem:[#allocation2 + $0x44] ss:$24 sps:$4 sm:$0xff]  }
 0x124   :  { %486 = vmatpush1.bf16.msra.mxu0 %v2707_v26  ;;  %446 = vmatprep.subr.bf16.mxu1 %v2708_v27  ;;  %v2750_v56 = vld [vmem:[#allocation2 + $0x40] ss:$24 sps:$4 sm:$0xff]   ;;  %v2755_v57 = vld [vmem:[#allocation2 + $0x14] ss:$24 sps:$4 sm:$0xff]   ;;  %v2753_v58 = vld [vmem:[#allocation2 + $0x10] ss:$24 sps:$4 sm:$0xff]  }
 0x125   :  { %487 = vmatprep.subr.bf16.mxu0 %v2710_v28 }
 0x127   :  { %447 = vmatpush1.bf16.msra.mxu1 %v2712_v29 }
 0x128   :  { %488 = vmatpush1.bf16.msra.mxu0 %v2713_v30  ;;  %448 = vmatprep.subr.bf16.mxu1 %v2714_v31 }
 0x129   :  { %489 = vmatprep.subr.bf16.mxu0 %v2716_v32 }
 0x12b   :  { %449 = vmatpush1.bf16.msra.mxu1 %v2718_v33 }
 0x12c   :  { %490 = vmatpush1.bf16.msra.mxu0 %v2719_v34  ;;  %450 = vmatprep.subr.bf16.mxu1 %v2720_v35 }
 0x12d   :  { %491 = vmatprep.subr.bf16.mxu0 %v2722_v36 }
 0x12f   :  { %451 = vmatpush1.bf16.msra.mxu1 %v2724_v37 }
 0x130   :  { %492 = vmatpush1.bf16.msra.mxu0 %v2725_v38  ;;  %452 = vmatprep.subr.bf16.mxu1 %v2726_v39 }
 0x131   :  { %493 = vmatprep.subr.bf16.mxu0 %v2728_v40 }
 0x133   :  { %453 = vmatpush1.bf16.msra.mxu1 %v2730_v41 }
 0x134   :  { %494 = vmatpush1.bf16.msra.mxu0 %v2731_v42  ;;  %520 = vmatprep.subr.bf16.mxu1 %v2734_v43 }
 0x136   :  { %471 = vmatmul.mubr.bf16.vlgmr.msra.gmra.mxu1 %v3291_v1 }
 0x137   :  { %512 = vmatmul.mubr.bf16.vlgmr.msra.gmra.mxu0 %v3291_v1  ;;  %521 = vmatpush1.bf16.msra.mxu1 %v2732_v44 }
 0x138   :  { %552 = vmatprep.mubr.bf16.mxu1 %v3232_v10  ;;  %522 = vmatprep.subr.bf16.mxu1 %v2737_v45 }
 0x13b   :  { %523 = vmatpush1.bf16.msra.mxu1 %v2735_v46 }
 0x13c   :  { %524 = vmatprep.subr.bf16.mxu1 %v2740_v47 }
 0x13f   :  { %525 = vmatpush1.bf16.msra.mxu1 %v2738_v48 }
 0x140   :  { %526 = vmatprep.subr.bf16.mxu1 %v2743_v49 }
 0x143   :  { %527 = vmatpush1.bf16.msra.mxu1 %v2741_v50 }
 0x144   :  { %528 = vmatprep.subr.bf16.mxu1 %v2746_v51 }
 0x147   :  { %529 = vmatpush1.bf16.msra.mxu1 %v2744_v52 }
 0x148   :  { %530 = vmatprep.subr.bf16.mxu1 %v2749_v53 }
 0x14b   :  { %531 = vmatpush1.bf16.msra.mxu1 %v2747_v54 }
 0x14c   :  { %532 = vmatprep.subr.bf16.mxu1 %v2752_v55 }
 0x14f   :  { %533 = vmatpush1.bf16.msra.mxu1 %v2750_v56 }
 0x150   :  { %534 = vmatprep.subr.bf16.mxu1 %v2755_v57 }
 0x153   :  { %535 = vmatpush1.bf16.msra.mxu1 %v2753_v58 }
 0x156   :  { %553 = vmatmul.mubr.bf16.vlgmr.msra.gmra.mxu1 %v3291_v1 }
 0x1f6   :  { %v3345_v59 = vpop.f32.mrf.mxu1 }
 0x1f7   :  { %v3347_v60 = vpop.f32.mrf.mxu0  ;;  %v561_v61 = vmul.f32 %v3345_v59, %v3345_v59  ;;  %v567_v62 = vrot.slane %v3345_v59, 4 }
 0x1f8   :  { %v563_v63 = vmul.f32 %v3347_v60, %v3347_v60  ;;  %v579_v3 = vrot.slane %v3347_v60, 4  ;;  %v3355_v5 = vpop.f32.mrf.mxu1 }
 0x1f9   :  { %v3357_v7 = vpop.f32.mrf.mxu0  ;;  %v568_v1 = vadd.f32 %v567_v62, %v3345_v59  ;;  %v603_v8 = vrot.slane %v561_v61, 4  ;;  %v562_v12 = vmul.f32 %v3355_v5, %v3355_v5  ;;  %v573_v13 = vrot.slane %v3355_v5, 4 }
 0x1fa   :  { %v580_v9 = vadd.f32 %v579_v3, %v3347_v60  ;;  %v615_v11 = vrot.slane %v563_v63, 4  ;;  %v564_v14 = vmul.f32 %v3357_v7, %v3357_v7  ;;  %v585_v15 = vrot.slane %v3357_v7, 4  ;;  %v476_v16 = vpop.f32.mrf.mxu1 }
 0x1fb   :  { %v517_v17 = vpop.f32.mrf.mxu0  ;;  %v569_v18 = vrot.slane %v568_v1, 2  ;;  %v604_v19 = vadd.f32 %v603_v8, %v561_v61  ;;  %v574_v22 = vadd.f32 %v573_v13, %v3355_v5  ;;  %v609_v23 = vrot.slane %v562_v12, 4 }
 0x1fc   :  { %v581_v20 = vrot.slane %v580_v9, 2  ;;  %v616_v21 = vadd.f32 %v615_v11, %v563_v63  ;;  %v586_v24 = vadd.f32 %v585_v15, %v3357_v7  ;;  %v621_v25 = vrot.slane %v564_v14, 4  ;;  %v477_v26 = vpop.f32.mrf.mxu1 }
 0x1fd   :  { %v518_v27 = vpop.f32.mrf.mxu0  ;;  %v570_v28 = vadd.f32 %v569_v18, %v568_v1  ;;  %v605_v29 = vrot.slane %v604_v19, 2  ;;  %v575_v32 = vrot.slane %v574_v22, 2  ;;  %v610_v33 = vadd.f32 %v609_v23, %v562_v12 }
 0x1fe   :  { %v582_v30 = vadd.f32 %v581_v20, %v580_v9  ;;  %v617_v31 = vrot.slane %v616_v21, 2  ;;  %v587_v34 = vrot.slane %v586_v24, 2  ;;  %v622_v41 = vadd.f32 %v621_v25, %v564_v14 }
 0x1ff   :  { %v571_v35 = vrot.slane %v570_v28, 1  ;;  %v606_v36 = vadd.f32 %v605_v29, %v604_v19  ;;  %v576_v39 = vadd.f32 %v575_v32, %v574_v22  ;;  %v611_v40 = vrot.slane %v610_v33, 2 }
 0x200   :  { %v583_v37 = vrot.slane %v582_v30, 1  ;;  %v618_v38 = vadd.f32 %v617_v31, %v616_v21  ;;  %v588_v48 = vadd.f32 %v587_v34, %v586_v24  ;;  %v623_v55 = vrot.slane %v622_v41, 2 }
 0x201   :  { %v572_v42 = vadd.f32 %v571_v35, %v570_v28  ;;  %v607_v43 = vrot.slane %v606_v36, 1  ;;  %v577_v46 = vrot.slane %v576_v39, 1  ;;  %v612_v47 = vadd.f32 %v611_v40, %v610_v33  ;;  %v3396_v33 = vld [vmem:[#allocation12] sm:$0x3f] }
 0x202   :  { %v584_v44 = vadd.f32 %v583_v37, %v582_v30  ;;  %v619_v45 = vrot.slane %v618_v38, 1  ;;  %v589_v1 = vrot.slane %v588_v48, 1  ;;  %v624_v12 = vadd.f32 %v623_v55, %v622_v41  ;;  %v3389_v30 = vld [vmem:[#allocation10] sm:$0x3f] }
 0x203   :  { %v608_v49 = vadd.f32 %v607_v43, %v606_v36  ;;  %v639_v50 = vmul.f32 0.125, %v572_v42  ;;  %v578_v53 = vadd.f32 %v577_v46, %v576_v39  ;;  %v613_v54 = vrot.slane %v612_v47, 1 }
 0x204   :  { %v620_v51 = vadd.f32 %v619_v45, %v618_v38  ;;  %v3369_v52 = vmul.f32 0.125, %v584_v44  ;;  %v696_v17 = vlaneseq  ;;  %v590_v20 = vadd.f32 %v589_v1, %v588_v48 }
 0x205   :  { %v645_v56 = vmul.f32 0.125, %v608_v49  ;;  %v651_v57 = vmul.f32 %v639_v50, %v639_v50  ;;  %v614_v62 = vadd.f32 %v613_v54, %v612_v47  ;;  %v3373_v63 = vmul.f32 0.125, %v578_v53 }
 0x206   :  { %v647_v58 = vmul.f32 0.125, %v620_v51  ;;  %v653_v61 = vmul.f32 %v3369_v52, %v3369_v52  ;;  %v625_v21 = vrot.slane %v624_v12, 1  ;;  %v3377_v23 = vshrl.u32 %v696_v17, 7 }
 0x207   :  { %v657_v3 = vsub.f32 %v645_v56, %v651_v57  ;;  %v646_v9 = vmul.f32 0.125, %v614_v62  ;;  %v652_v11 = vmul.f32 %v3373_v63, %v3373_v63  ;;  %v3379_v25 = vmul.f32 0.125, %v590_v20 }
 0x208   :  { %v659_v8 = vsub.f32 %v647_v58, %v653_v61  ;;  %v626_v24 = vadd.f32 %v625_v21, %v624_v12  ;;  %v3382_v26 = vsub.s32 0, %v3377_v23  ;;  %v3385_v27 = vsub.s32 2, %v3377_v23 }
 0x209   :  { %v663_v13 = vmax.f32 %v657_v3, 0.0  ;;  %v658_v15 = vsub.f32 %v646_v9, %v652_v11  ;;  %v654_v29 = vmul.f32 %v3379_v25, %v3379_v25  ;;  %v3392_v31 = vsub.s32 1, %v3377_v23 }
 0x20a   :  { %v665_v14 = vmax.f32 %v659_v8, 0.0  ;;  %v648_v28 = vmul.f32 0.125, %v626_v24  ;;  %v671_v36 = vsub.f32 %v3345_v59, %v639_v50  ;;  %v699_v37 = vrot.slane %v3389_v30, %v3382_v26 }
 0x20b   :  { %v677_v16 = vadd.f32 1e-05, %v663_v13  ;;  %v664_v19 = vmax.f32 %v658_v15, 0.0  ;;  %v707_v38 = vrot.slane %v3389_v30, %v3385_v27  ;;  %v736_v59 = vrot.slane %v3396_v33, %v3382_v26 }
 0x20c   :  { %v679_v18 = vadd.f32 1e-05, %v665_v14  ;;  %v660_v39 = vsub.f32 %v648_v28, %v654_v29  ;;  %v673_v46 = vsub.f32 %v3347_v60, %v3369_v52  ;;  %v744_v47 = vrot.slane %v3396_v33, %v3385_v27 }
 0x20d   :  { %2756 = vrsqrt.f32 %v677_v16  ;;  %v678_v22 = vadd.f32 1e-05, %v664_v19  ;;  %v703_v48 = vrot.slane %v3389_v30, %v3392_v31  ;;  %v672_v57 = vsub.f32 %v3355_v5, %v3373_v63 }
 0x20e   :  { %2758 = vrsqrt.f32 %v679_v18  ;;  %v666_v58 = vmax.f32 %v660_v39, 0.0  ;;  %v740_v12 = vrot.slane %v3396_v33, %v3392_v31 }
 0x20f   :  { %2760 = vrsqrt.f32 %v678_v22 }
 0x210   :  { %v680_v20 = vadd.f32 1e-05, %v666_v58 }
 0x212   :  { %2762 = vrsqrt.f32 %v680_v20 }
 0x216   :  { %v3394_v32 = vpop.f32.mrf.mxu1 }
 0x217   :  { %v565_v34 = vmul.f32 %v3394_v32, %v3394_v32  ;;  %v591_v35 = vrot.slane %v3394_v32, 4 }
 0x218   :  { %v3406_v40 = vpop.f32.mrf.mxu1 }
 0x219   :  { %v592_v41 = vadd.f32 %v591_v35, %v3394_v32  ;;  %v627_v42 = vrot.slane %v565_v34, 4  ;;  %v566_v43 = vmul.f32 %v3406_v40, %v3406_v40  ;;  %v597_v44 = vrot.slane %v3406_v40, 4 }
 0x21a   :  { %v2757_v45 = vpop.eup %2756  ;;  %v558_v49 = vpop.f32.mrf.mxu1 }
 0x21b   :  { %v2759_v50 = vpop.eup %2758  ;;  %v689_v51 = vmul.f32 %v2757_v45, %v671_v36  ;;  %v593_v53 = vrot.slane %v592_v41, 2  ;;  %v628_v54 = vadd.f32 %v627_v42, %v565_v34  ;;  %v598_v55 = vadd.f32 %v597_v44, %v3406_v40 }
 0x21c   :  { %v691_v56 = vmul.f32 %v2759_v50, %v673_v46  ;;  %v633_v61 = vrot.slane %v566_v43, 4  ;;  %v559_v60 = vpop.f32.mrf.mxu1  ;;  %v2761_v52 = vpop.eup %2760 }
 0x21d   :  { %v726_v62 = vmul.f32 %v699_v37, %v689_v51  ;;  %v594_v3 = vadd.f32 %v593_v53, %v592_v41  ;;  %v629_v1 = vrot.slane %v628_v54, 2  ;;  %v599_v8 = vrot.slane %v598_v55, 2 }
 0x21e   :  { %v728_v9 = vmul.f32 %v707_v38, %v691_v56  ;;  %v690_v11 = vmul.f32 %v2761_v52, %v672_v57  ;;  %v634_v13 = vadd.f32 %v633_v61, %v566_v43  ;;  %v674_v56 = vsub.f32 %v3357_v7, %v3379_v25 }
 0x21f   :  { %v3425_v14 = vadd.f32 %v736_v59, %v726_v62  ;;  %v595_v15 = vrot.slane %v594_v3, 1  ;;  %v630_v16 = vadd.f32 %v629_v1, %v628_v54  ;;  %v600_v63 = vadd.f32 %v599_v8, %v598_v55  ;;  %v2763_v55 = vpop.eup %2762 }
 0x220   :  { %v765_v17 = vadd.f32 %v744_v47, %v728_v9  ;;  %v727_v5 = vmul.f32 %v703_v48, %v690_v11  ;;  %v635_v18 = vrot.slane %v634_v13, 2  ;;  %v710_v54 = vsub.s32 3, %v3377_v23 }
 0x221   :  { %v769_v19 = vmax.f32 %v3425_v14, 0.0  ;;  %v596_v21 = vadd.f32 %v595_v15, %v594_v3  ;;  %v631_v22 = vrot.slane %v630_v16, 1  ;;  %v601_v28 = vrot.slane %v600_v63, 1 }
 0x222   :  { %v764_v24 = vadd.f32 %v740_v12, %v727_v5  ;;  %v636_v29 = vadd.f32 %v635_v18, %v634_v13  ;;  %v771_v36 = vmax.f32 %v765_v17, 0.0  ;;  %v692_v57 = vmul.f32 %v2763_v55, %v674_v56 }
 0x223   :  { %v632_v34 = vadd.f32 %v631_v22, %v630_v16  ;;  %v643_v35 = vmul.f32 0.125, %v596_v21  ;;  %v602_v38 = vadd.f32 %v601_v28, %v600_v63  ;;  %v711_v58 = vrot.slane %v3389_v30, %v710_v54 }
 0x224   :  { %v770_v37 = vmax.f32 %v764_v24, 0.0  ;;  %v637_v39 = vrot.slane %v636_v29, 1  ;;  %v714_v61 = vsub.s32 4, %v3377_v23  ;;  %v718_v60 = vsub.s32 5, %v3377_v23 }
 0x225   :  { %v649_v41 = vmul.f32 0.125, %v632_v34  ;;  %v655_v42 = vmul.f32 %v643_v35, %v643_v35  ;;  %v644_v45 = vmul.f32 0.125, %v602_v38  ;;  %v729_v52 = vmul.f32 %v711_v58, %v692_v57 }
 0x226   :  { %v3428_v43 = vadd.f32 %v771_v36, %v770_v37  ;;  %v638_v44 = vadd.f32 %v637_v39, %v636_v29  ;;  %v748_v62 = vrot.slane %v3396_v33, %v710_v54  ;;  %v675_v3 = vsub.f32 %v3394_v32, %v643_v35 }
 0x227   :  { %v661_v59 = vsub.f32 %v649_v41, %v655_v42  ;;  %v656_v47 = vmul.f32 %v644_v45, %v644_v45  ;;  %v715_v1 = vrot.slane %v3389_v30, %v714_v61  ;;  %v752_v11 = vrot.slane %v3396_v33, %v714_v61 }
 0x228   :  { %v650_v46 = vmul.f32 0.125, %v638_v44  ;;  %v676_v7 = vsub.f32 %v3406_v40, %v644_v45  ;;  %v719_v25 = vrot.slane %v3389_v30, %v718_v60  ;;  %v766_v13 = vadd.f32 %v748_v62, %v729_v52 }
 0x229   :  { %v667_v48 = vmax.f32 %v661_v59, 0.0  ;;  %v756_v23 = vrot.slane %v3396_v33, %v718_v60 }
 0x22a   :  { %v662_v49 = vsub.f32 %v650_v46, %v656_v47  ;;  %v772_v63 = vmax.f32 %v766_v13, 0.0 }
 0x22b   :  { %v681_v50 = vadd.f32 1e-05, %v667_v48 }
 0x22c   :  { %v668_v51 = vmax.f32 %v662_v49, 0.0 }
 0x22d   :  { %2764 = vrsqrt.f32 %v681_v50 }
 0x22e   :  { %v682_v53 = vadd.f32 1e-05, %v668_v51 }
 0x230   :  { %2766 = vrsqrt.f32 %v682_v53 }
 0x23a   :  { %v2765_v8 = vpop.eup %2764 }
 0x23b   :  { %v693_v9 = vmul.f32 %v2765_v8, %v675_v3 }
 0x23d   :  { %v2767_v12 = vpop.eup %2766  ;;  %v730_v15 = vmul.f32 %v715_v1, %v693_v9 }
 0x23e   :  { %v694_v16 = vmul.f32 %v2767_v12, %v676_v7 }
 0x23f   :  { %v767_v17 = vadd.f32 %v752_v11, %v730_v15 }
 0x240   :  { %v731_v5 = vmul.f32 %v719_v25, %v694_v16 }
 0x241   :  { %v773_v32 = vmax.f32 %v767_v17, 0.0 }
 0x242   :  { %v768_v18 = vadd.f32 %v756_v23, %v731_v5 }
 0x243   :  { %v779_v20 = vadd.f32 %v773_v32, %v772_v63 }
 0x244   :  { %v774_v21 = vmax.f32 %v768_v18, 0.0 }
 0x246   :  { %v3443_v22 = vadd.f32 %v779_v20, %v774_v21 }
 0x247   :  { %3206 = dma.done.wait [#allocation3 + $0x1], 3072 }
 0x248   :  { %3207 = vsyncadd [#allocation3 + $0x1], 4294964224  ;;  %s784_s11 = scalar_lea.hbm %s3684_s3, 576  ;;  %2574 = vmatprep.subr.bf16.mxu1 %v3225_v0  ;;  %2590 = vmatprep.mubr.msk.bf16.mxu1 %vm3226_vm0, %v3225_v0  ;;  %s3073_s1 = scalar_lea.vmem %s3301_s5, 3072 }
 0x249   :  { %p3074_p7 = scmp.ne.s32.totalorder %s3301_s5, %s3073_s1  ;;  %p3079_p8 = scmp.lt.s32.totalorder %s3306_s20, %s3073_s1 }
 0x24b   :  { %p3080_p9 = por %p3079_p8, %p3033_p12 }
 0x24d   :  { %p3081_p10 = pnand %p3080_p9, %p3074_p7 }
 0x24f   :  { %3084 = shalt.err (!%p3081_p10)  }
 0x250   :  { %789 = dma.hbm_to_vmem [thread:$0]  %s784_s11, 3072, %s3301_s5, [#allocation3], %s3228_s21, %s3229_s22, %s3233_s8  ;;  %982 = vmatprep.mubr.bf16.mxu0 %v3232_v10 }
 0x251   :  { %v2768_v30 = vld [vmem:[#allocation2 + $0x2d4] ss:$24 sps:$4 sm:$0xff]   ;;  %v2770_v33 = vld [vmem:[#allocation2 + $0x2d8] ss:$24 sps:$4 sm:$0xff]   ;;  %v2772_v24 = vld [vmem:[#allocation2 + $0x2a4] ss:$24 sps:$4 sm:$0xff]  }
 0x252   :  { %950 = vmatprep.subr.bf16.mxu0 %v2768_v30  ;;  %v2771_v40 = vld [vmem:[#allocation2 + $0x2d0] ss:$24 sps:$4 sm:$0xff]   ;;  %2575 = vmatpush3.bf16.msra.mxu1 %v2770_v33  ;;  %v2775_v29 = vld [vmem:[#allocation2 + $0x2a0] ss:$24 sps:$4 sm:$0xff]   ;;  %v2776_v34 = vld [vmem:[#allocation2 + $0x274] ss:$24 sps:$4 sm:$0xff]  }
 0x253   :  { %951 = vmatpush1.bf16.msra.mxu0 %v2771_v40  ;;  %2576 = vmatprep.subr.bf16.mxu1 %v3225_v0  ;;  %v2774_v28 = vld [vmem:[#allocation2 + $0x2a8] ss:$24 sps:$4 sm:$0xff]   ;;  %v2778_v35 = vld [vmem:[#allocation2 + $0x278] ss:$24 sps:$4 sm:$0xff]   ;;  %v2780_v37 = vld [vmem:[#allocation2 + $0x244] ss:$24 sps:$4 sm:$0xff]  }
 0x254   :  { %952 = vmatprep.subr.bf16.mxu0 %v2772_v24  ;;  %v2779_v36 = vld [vmem:[#allocation2 + $0x270] ss:$24 sps:$4 sm:$0xff]   ;;  %v2783_v39 = vld [vmem:[#allocation2 + $0x240] ss:$24 sps:$4 sm:$0xff]   ;;  %v2784_v41 = vld [vmem:[#allocation2 + $0x214] ss:$24 sps:$4 sm:$0xff]  }
 0x255   :  { %v2782_v38 = vld [vmem:[#allocation2 + $0x248] ss:$24 sps:$4 sm:$0xff]   ;;  %v2786_v42 = vld [vmem:[#allocation2 + $0x218] ss:$24 sps:$4 sm:$0xff]   ;;  %v2788_v45 = vld [vmem:[#allocation2 + $0x1e4] ss:$24 sps:$4 sm:$0xff]  }
 0x256   :  { %2577 = vmatpush3.bf16.msra.mxu1 %v2774_v28  ;;  %v2787_v44 = vld [vmem:[#allocation2 + $0x210] ss:$24 sps:$4 sm:$0xff]   ;;  %v2791_v46 = vld [vmem:[#allocation2 + $0x1e0] ss:$24 sps:$4 sm:$0xff]   ;;  %v2792_v47 = vld [vmem:[#allocation2 + $0x1b4] ss:$24 sps:$4 sm:$0xff]  }
 0x257   :  { %953 = vmatpush1.bf16.msra.mxu0 %v2775_v29  ;;  %2578 = vmatprep.subr.bf16.mxu1 %v3225_v0  ;;  %v2790_v59 = vld [vmem:[#allocation2 + $0x1e8] ss:$24 sps:$4 sm:$0xff]   ;;  %v2794_v48 = vld [vmem:[#allocation2 + $0x1b8] ss:$24 sps:$4 sm:$0xff]   ;;  %v2796_v50 = vld [vmem:[#allocation2 + $0x184] ss:$24 sps:$4 sm:$0xff]  }
 0x258   :  { %954 = vmatprep.subr.bf16.mxu0 %v2776_v34  ;;  %v2795_v49 = vld [vmem:[#allocation2 + $0x1b0] ss:$24 sps:$4 sm:$0xff]   ;;  %v2799_v53 = vld [vmem:[#allocation2 + $0x180] ss:$24 sps:$4 sm:$0xff]  }
 0x259   :  { %v2798_v51 = vld [vmem:[#allocation2 + $0x188] ss:$24 sps:$4 sm:$0xff]  }
 0x25a   :  { %2579 = vmatpush3.bf16.msra.mxu1 %v2778_v35 }
 0x25b   :  { %955 = vmatpush1.bf16.msra.mxu0 %v2779_v36  ;;  %2580 = vmatprep.subr.bf16.mxu1 %v3225_v0 }
 0x25c   :  { %956 = vmatprep.subr.bf16.mxu0 %v2780_v37 }
 0x25e   :  { %2581 = vmatpush3.bf16.msra.mxu1 %v2782_v38 }
 0x25f   :  { %957 = vmatpush1.bf16.msra.mxu0 %v2783_v39  ;;  %2582 = vmatprep.subr.bf16.mxu1 %v3225_v0 }
 0x260   :  { %958 = vmatprep.subr.bf16.mxu0 %v2784_v41 }
 0x262   :  { %2583 = vmatpush3.bf16.msra.mxu1 %v2786_v42 }
 0x263   :  { %959 = vmatpush1.bf16.msra.mxu0 %v2787_v44  ;;  %2584 = vmatprep.subr.bf16.mxu1 %v3225_v0 }
 0x264   :  { %960 = vmatprep.subr.bf16.mxu0 %v2788_v45 }
 0x266   :  { %2585 = vmatpush3.bf16.msra.mxu1 %v2790_v59 }
 0x267   :  { %961 = vmatpush1.bf16.msra.mxu0 %v2791_v46  ;;  %2586 = vmatprep.subr.bf16.mxu1 %v3225_v0 }
 0x268   :  { %962 = vmatprep.subr.bf16.mxu0 %v2792_v47 }
 0x26a   :  { %2587 = vmatpush3.bf16.msra.mxu1 %v2794_v48 }
 0x26b   :  { %963 = vmatpush1.bf16.msra.mxu0 %v2795_v49  ;;  %2588 = vmatprep.subr.bf16.mxu1 %v3225_v0 }
 0x26c   :  { %964 = vmatprep.subr.bf16.mxu0 %v2796_v50 }
 0x26e   :  { %2589 = vmatpush3.bf16.msra.mxu1 %v2798_v51 }
 0x26f   :  { %965 = vmatpush1.bf16.msra.mxu0 %v2799_v53 }
 0x271   :  { %2591 = vmatmul.mubr.bf16.vlgmr.msra.gmra.mxu1 %v3293_v2 }
 0x272   :  { %983 = vmatmul.mubr.bf16.vlgmr.msra.gmra.mxu0 %v3293_v2 }
 0x331   :  { %v3471_v54 = vpop.f32.mrf.mxu1 }
 0x332   :  { %v1033_v55 = vmul.f32 %v3471_v54, %v3471_v54  ;;  %v1046_v56 = vrot.slane %v3471_v54, 4  ;;  %v3476_v57 = vpop.f32.mrf.mxu0 }
 0x333   :  { %v1031_v58 = vmul.f32 %v3476_v57, %v3476_v57  ;;  %v1034_v61 = vrot.slane %v3476_v57, 4  ;;  %v2592_v60 = vpop.f32.mrf.mxu1 }
 0x334   :  { %v1047_v52 = vadd.f32 %v1046_v56, %v3471_v54  ;;  %v1064_v62 = vrot.slane %v1033_v55, 4  ;;  %v3482_v3 = vpop.f32.mrf.mxu0 }
 0x335   :  { %v1035_v2 = vadd.f32 %v1034_v61, %v3476_v57  ;;  %v1052_v1 = vrot.slane %v1031_v58, 4  ;;  %v1032_v8 = vmul.f32 %v3482_v3, %v3482_v3  ;;  %v1040_v9 = vrot.slane %v3482_v3, 4  ;;  %v1028_v11 = vpop.f32.mrf.mxu1 }
 0x336   :  { %v1048_v7 = vrot.slane %v1047_v52, 2  ;;  %v1065_v25 = vadd.f32 %v1064_v62, %v1033_v55  ;;  %v988_v12 = vpop.f32.mrf.mxu0 }
 0x337   :  { %v1036_v13 = vrot.slane %v1035_v2, 2  ;;  %v1053_v15 = vadd.f32 %v1052_v1, %v1031_v58  ;;  %v1041_v16 = vadd.f32 %v1040_v9, %v3482_v3  ;;  %v1058_v23 = vrot.slane %v1032_v8, 4  ;;  %v2593_v17 = vpop.f32.mrf.mxu1 }
 0x338   :  { %v1049_v5 = vadd.f32 %v1048_v7, %v1047_v52  ;;  %v1066_v63 = vrot.slane %v1065_v25, 2  ;;  %v989_v32 = vpop.f32.mrf.mxu0  ;;  %v1085_v7 = vld [vmem:[#allocation10 + $0x6] sm:$0x7] }
 0x339   :  { %v1037_v18 = vadd.f32 %v1036_v13, %v1035_v2  ;;  %v1054_v20 = vrot.slane %v1053_v15, 2  ;;  %v1042_v21 = vrot.slane %v1041_v16, 2  ;;  %v1059_v30 = vadd.f32 %v1058_v23, %v1032_v8 }
 0x33a   :  { %v1050_v33 = vrot.slane %v1049_v5, 1  ;;  %v1067_v40 = vadd.f32 %v1066_v63, %v1065_v25  ;;  %v1086_v25 = vld [vmem:[#allocation12 + $0x6] sm:$0x7]  ;;  %v1111_v13 = vrot.slane %v1085_v7, %v3385_v27  ;;  %v1103_v23 = vrot.slane %v1085_v7, %v3382_v26 }
 0x33b   :  { %v1038_v24 = vrot.slane %v1037_v18, 1  ;;  %v1055_v28 = vadd.f32 %v1054_v20, %v1053_v15  ;;  %v1043_v29 = vadd.f32 %v1042_v21, %v1041_v16  ;;  %v1060_v34 = vrot.slane %v1059_v30, 2 }
 0x33c   :  { %v1051_v35 = vadd.f32 %v1050_v33, %v1049_v5  ;;  %v1068_v36 = vrot.slane %v1067_v40, 1  ;;  %v1130_v63 = vrot.slane %v1086_v25, %v3385_v27 }
 0x33d   :  { %v1039_v37 = vadd.f32 %v1038_v24, %v1037_v18  ;;  %v1056_v38 = vrot.slane %v1055_v28, 1  ;;  %v1044_v39 = vrot.slane %v1043_v29, 1  ;;  %v1061_v41 = vadd.f32 %v1060_v34, %v1059_v30 }
 0x33e   :  { %v1069_v42 = vadd.f32 %v1068_v36, %v1067_v40  ;;  %v1072_v44 = vmul.f32 0.125, %v1051_v35  ;;  %v1122_v18 = vrot.slane %v1086_v25, %v3382_v26  ;;  %v1107_v30 = vrot.slane %v1085_v7, %v3392_v31 }
 0x33f   :  { %v1057_v45 = vadd.f32 %v1056_v38, %v1055_v28  ;;  %v1070_v59 = vmul.f32 0.125, %v1039_v37  ;;  %v1045_v46 = vadd.f32 %v1044_v39, %v1043_v29  ;;  %v1062_v47 = vrot.slane %v1061_v41, 1 }
 0x340   :  { %v1075_v48 = vmul.f32 0.125, %v1069_v42  ;;  %v1078_v49 = vmul.f32 %v1072_v44, %v1072_v44  ;;  %v1089_v12 = vsub.f32 %v3471_v54, %v1072_v44 }
 0x341   :  { %v1073_v50 = vmul.f32 0.125, %v1057_v45  ;;  %v1076_v51 = vmul.f32 %v1070_v59, %v1070_v59  ;;  %v1063_v53 = vadd.f32 %v1062_v47, %v1061_v41  ;;  %v1071_v56 = vmul.f32 0.125, %v1045_v46 }
 0x342   :  { %v1081_v55 = vsub.f32 %v1075_v48, %v1078_v49  ;;  %v1087_v16 = vsub.f32 %v3476_v57, %v1070_v59  ;;  %v1126_v57 = vrot.slane %v1086_v25, %v3392_v31 }
 0x343   :  { %v1079_v58 = vsub.f32 %v1073_v50, %v1076_v51  ;;  %v1074_v61 = vmul.f32 0.125, %v1063_v53  ;;  %v1077_v52 = vmul.f32 %v1071_v56, %v1071_v56  ;;  %v1088_v21 = vsub.f32 %v3482_v3, %v1071_v56 }
 0x344   :  { %v1084_v60 = vmax.f32 %v1081_v55, 0.0 }
 0x345   :  { %v1082_v62 = vmax.f32 %v1079_v58, 0.0  ;;  %v1080_v1 = vsub.f32 %v1074_v61, %v1077_v52 }
 0x346   :  { %v1092_v2 = vadd.f32 1e-05, %v1084_v60 }
 0x347   :  { %v1090_v8 = vadd.f32 1e-05, %v1082_v62  ;;  %v1083_v9 = vmax.f32 %v1080_v1, 0.0 }
 0x348   :  { %2800 = vrsqrt.f32 %v1092_v2 }
 0x349   :  { %2802 = vrsqrt.f32 %v1090_v8  ;;  %v1091_v11 = vadd.f32 1e-05, %v1083_v9 }
 0x34b   :  { %2804 = vrsqrt.f32 %v1091_v11 }
 0x355   :  { %v2801_v15 = vpop.eup %2800 }
 0x356   :  { %v2803_v17 = vpop.eup %2802  ;;  %v1098_v5 = vmul.f32 %v2801_v15, %v1089_v12 }
 0x357   :  { %v1096_v32 = vmul.f32 %v2803_v17, %v1087_v16 }
 0x358   :  { %v1117_v20 = vmul.f32 %v1111_v13, %v1098_v5  ;;  %v2805_v54 = vpop.eup %2804 }
 0x359   :  { %v1115_v33 = vmul.f32 %v1103_v23, %v1096_v32  ;;  %v1097_v24 = vmul.f32 %v2805_v54, %v1088_v21 }
 0x35a   :  { %v1136_v40 = vadd.f32 %v1130_v63, %v1117_v20 }
 0x35b   :  { %v1134_v28 = vadd.f32 %v1122_v18, %v1115_v33  ;;  %v1116_v34 = vmul.f32 %v1107_v30, %v1097_v24 }
 0x35c   :  { %v1139_v29 = vmax.f32 %v1136_v40, 0.0 }
 0x35d   :  { %v1137_v35 = vmax.f32 %v1134_v28, 0.0  ;;  %v1135_v37 = vadd.f32 %v1126_v57, %v1116_v34 }
 0x35e   :  { %v3499_v36 = vadd.f32 %v1139_v29, %v3443_v22 }
 0x35f   :  { %v3503_v38 = vadd.f32 %v1137_v35, %v769_v19  ;;  %v1138_v3 = vmax.f32 %v1135_v37, 0.0 }
 0x361   :  { %v3506_v39 = vadd.f32 %v1138_v3, %v3428_v43 }
 0x362   :  { %3208 = dma.done.wait [#allocation3], 3072 }
 0x363   :  { %3209 = vsyncadd [#allocation3], 4294964224  ;;  %s1145_s4 = scalar_lea.hbm %s3684_s3, 768  ;;  %1343 = vmatprep.mubr.bf16.mxu0 %v3232_v10  ;;  %2594 = vmatprep.subr.bf16.mxu1 %v3225_v0  ;;  %s3096_s14 = scalar_lea.vmem %s3327_s30, 2048 }
 0x364   :  { %p3097_p11 = scmp.ne.s32.totalorder %s3327_s30, %s3096_s14  ;;  %p3102_p13 = scmp.lt.s32.totalorder %s3306_s20, %s3096_s14 }
 0x366   :  { %p3103_p0 = por %p3102_p13, %p3055_p3 }
 0x368   :  { %p3104_p1 = pnand %p3103_p0, %p3097_p11 }
 0x36a   :  { %3107 = shalt.err (!%p3104_p1)  }
 0x36b   :  { %s3234_s15 = smov 8   ;;  %2610 = vmatprep.mubr.msk.bf16.mxu1 %vm3226_vm0, %v3225_v0 }
 0x36c   :  { %1150 = dma.hbm_to_vmem [thread:$0]  %s1145_s4, 2048, %s3327_s30, [#allocation3 + $0x1], %s3228_s21, %s3229_s22, %s3234_s15 }
 0x36d   :  { %v2806_v14 = vld [vmem:[#allocation2 + $0x154] ss:$24 sps:$4 sm:$0xff]   ;;  %v2808_v19 = vld [vmem:[#allocation2 + $0x150] ss:$24 sps:$4 sm:$0xff]   ;;  %v2809_v43 = vld [vmem:[#allocation2 + $0x124] ss:$24 sps:$4 sm:$0xff]  }
 0x36e   :  { %1311 = vmatprep.subr.bf16.mxu0 %v2806_v14  ;;  %v2811_v22 = vld [vmem:[#allocation2 + $0x120] ss:$24 sps:$4 sm:$0xff]   ;;  %v2812_v41 = vld [vmem:[#allocation2 + $0xf4] ss:$24 sps:$4 sm:$0xff]   ;;  %v2814_v42 = vld [vmem:[#allocation2 + $0xf0] ss:$24 sps:$4 sm:$0xff]  }
 0x36f   :  { %1312 = vmatpush1.bf16.msra.mxu0 %v2808_v19  ;;  %v2815_v44 = vld [vmem:[#allocation2 + $0xc4] ss:$24 sps:$4 sm:$0xff]   ;;  %v2817_v45 = vld [vmem:[#allocation2 + $0xc0] ss:$24 sps:$4 sm:$0xff]   ;;  %v2818_v46 = vld [vmem:[#allocation2 + $0x94] ss:$24 sps:$4 sm:$0xff]  }
 0x370   :  { %1313 = vmatprep.subr.bf16.mxu0 %v2809_v43  ;;  %v2830_v59 = vld [vmem:[#allocation2 + $0x158] ss:$24 sps:$4 sm:$0xff]   ;;  %v2831_v47 = vld [vmem:[#allocation2 + $0x128] ss:$24 sps:$4 sm:$0xff]   ;;  %v2821_v49 = vld [vmem:[#allocation2 + $0x64] ss:$24 sps:$4 sm:$0xff]  }
 0x371   :  { %2595 = vmatpush3.bf16.msra.mxu1 %v2830_v59  ;;  %v2820_v48 = vld [vmem:[#allocation2 + $0x90] ss:$24 sps:$4 sm:$0xff]   ;;  %v2823_v51 = vld [vmem:[#allocation2 + $0x60] ss:$24 sps:$4 sm:$0xff]   ;;  %v2824_v53 = vld [vmem:[#allocation2 + $0x34] ss:$24 sps:$4 sm:$0xff]  }
 0x372   :  { %2596 = vmatprep.subr.bf16.mxu1 %v3225_v0  ;;  %v2832_v50 = vld [vmem:[#allocation2 + $0xf8] ss:$24 sps:$4 sm:$0xff]   ;;  %v2833_v55 = vld [vmem:[#allocation2 + $0xc8] ss:$24 sps:$4 sm:$0xff]   ;;  %v2827_v58 = vld [vmem:[#allocation2 + $0x4] ss:$24 sps:$4 sm:$0xff]  }
 0x373   :  { %1314 = vmatpush1.bf16.msra.mxu0 %v2811_v22  ;;  %v2826_v56 = vld [vmem:[#allocation2 + $0x30] ss:$24 sps:$4 sm:$0xff]   ;;  %v2829_v60 = vld [vmem:[#allocation2] ss:$24 sps:$4 sm:$0xff]  }
 0x374   :  { %1315 = vmatprep.subr.bf16.mxu0 %v2812_v41  ;;  %v2834_v61 = vld [vmem:[#allocation2 + $0x98] ss:$24 sps:$4 sm:$0xff]   ;;  %v2835_v52 = vld [vmem:[#allocation2 + $0x68] ss:$24 sps:$4 sm:$0xff]  }
 0x375   :  { %2597 = vmatpush3.bf16.msra.mxu1 %v2831_v47  ;;  %v2836_v62 = vld [vmem:[#allocation2 + $0x38] ss:$24 sps:$4 sm:$0xff]   ;;  %v2837_v2 = vld [vmem:[#allocation2 + $0x8] ss:$24 sps:$4 sm:$0xff]  }
 0x376   :  { %2598 = vmatprep.subr.bf16.mxu1 %v3225_v0 }
 0x377   :  { %1316 = vmatpush1.bf16.msra.mxu0 %v2814_v42 }
 0x378   :  { %1317 = vmatprep.subr.bf16.mxu0 %v2815_v44 }
 0x379   :  { %2599 = vmatpush3.bf16.msra.mxu1 %v2832_v50 }
 0x37a   :  { %2600 = vmatprep.subr.bf16.mxu1 %v3225_v0 }
 0x37b   :  { %1318 = vmatpush1.bf16.msra.mxu0 %v2817_v45 }
 0x37c   :  { %1319 = vmatprep.subr.bf16.mxu0 %v2818_v46 }
 0x37d   :  { %2601 = vmatpush3.bf16.msra.mxu1 %v2833_v55 }
 0x37e   :  { %2602 = vmatprep.subr.bf16.mxu1 %v3225_v0 }
 0x37f   :  { %1320 = vmatpush1.bf16.msra.mxu0 %v2820_v48 }
 0x380   :  { %1321 = vmatprep.subr.bf16.mxu0 %v2821_v49 }
 0x381   :  { %2603 = vmatpush3.bf16.msra.mxu1 %v2834_v61 }
 0x382   :  { %2604 = vmatprep.subr.bf16.mxu1 %v3225_v0 }
 0x383   :  { %1322 = vmatpush1.bf16.msra.mxu0 %v2823_v51 }
 0x384   :  { %1323 = vmatprep.subr.bf16.mxu0 %v2824_v53 }
 0x385   :  { %2605 = vmatpush3.bf16.msra.mxu1 %v2835_v52 }
 0x386   :  { %2606 = vmatprep.subr.bf16.mxu1 %v3225_v0 }
 0x387   :  { %1324 = vmatpush1.bf16.msra.mxu0 %v2826_v56 }
 0x388   :  { %1325 = vmatprep.subr.bf16.mxu0 %v2827_v58 }
 0x389   :  { %2607 = vmatpush3.bf16.msra.mxu1 %v2836_v62 }
 0x38a   :  { %2608 = vmatprep.subr.bf16.mxu1 %v3225_v0 }
 0x38b   :  { %1326 = vmatpush1.bf16.msra.mxu0 %v2829_v60 }
 0x38c   :  { %2614 = vmatprep.subr.bf16.mxu0 %v3225_v0 }
 0x38d   :  { %2609 = vmatpush3.bf16.msra.mxu1 %v2837_v2 }
 0x38e   :  { %1344 = vmatmul.mubr.bf16.vlgmr.msra.gmra.mxu0 %v3320_v6 }
 0x38f   :  { %2616 = vmatprep.mubr.msk.bf16.mxu0 %vm3226_vm0, %v3225_v0 }
 0x390   :  { %2611 = vmatmul.mubr.bf16.vlgmr.msra.gmra.mxu1 %v3320_v6 }
 0x44e   :  { %v3537_v1 = vpop.f32.mrf.mxu0 }
 0x44f   :  { %v1392_v8 = vmul.f32 %v3537_v1, %v3537_v1  ;;  %v1395_v9 = vrot.slane %v3537_v1, 4 }
 0x450   :  { %v3542_v11 = vpop.f32.mrf.mxu0  ;;  %v3549_v40 = vpop.f32.mrf.mxu1 }
 0x451   :  { %v1396_v7 = vadd.f32 %v1395_v9, %v3537_v1  ;;  %v1413_v25 = vrot.slane %v1392_v8, 4  ;;  %v1393_v12 = vmul.f32 %v3542_v11, %v3542_v11  ;;  %v1401_v13 = vrot.slane %v3542_v11, 4 }
 0x452   :  { %v1349_v15 = vpop.f32.mrf.mxu0  ;;  %v1394_v34 = vmul.f32 %v3549_v40, %v3549_v40  ;;  %v1407_v35 = vrot.slane %v3549_v40, 4  ;;  %v2612_v37 = vpop.f32.mrf.mxu1 }
 0x453   :  { %v1397_v16 = vrot.slane %v1396_v7, 2  ;;  %v1414_v6 = vadd.f32 %v1413_v25, %v1392_v8  ;;  %v1402_v23 = vadd.f32 %v1401_v13, %v3542_v11  ;;  %v1419_v17 = vrot.slane %v1393_v12, 4 }
 0x454   :  { %v1350_v5 = vpop.f32.mrf.mxu0  ;;  %v1408_v22 = vadd.f32 %v1407_v35, %v3549_v40  ;;  %v1425_v41 = vrot.slane %v1394_v34, 4  ;;  %v1389_v42 = vpop.f32.mrf.mxu1 }
 0x455   :  { %v1398_v63 = vadd.f32 %v1397_v16, %v1396_v7  ;;  %v1415_v32 = vrot.slane %v1414_v6, 2  ;;  %v1403_v18 = vrot.slane %v1402_v23, 2  ;;  %v1420_v20 = vadd.f32 %v1419_v17, %v1393_v12  ;;  %v1447_v5 = vld [vmem:[#allocation12 + $0x9] sm:$0x7] }
 0x456   :  { %v1409_v47 = vrot.slane %v1408_v22, 2  ;;  %v1426_v48 = vadd.f32 %v1425_v41, %v1394_v34  ;;  %v2613_v49 = vpop.f32.mrf.mxu1 }
 0x457   :  { %v1399_v21 = vrot.slane %v1398_v63, 1  ;;  %v1416_v30 = vadd.f32 %v1415_v32, %v1414_v6  ;;  %v1404_v54 = vadd.f32 %v1403_v18, %v1402_v23  ;;  %v1421_v33 = vrot.slane %v1420_v20, 2  ;;  %v1446_v23 = vld [vmem:[#allocation10 + $0x9] sm:$0x7] }
 0x458   :  { %v1410_v55 = vadd.f32 %v1409_v47, %v1408_v22  ;;  %v1427_v56 = vrot.slane %v1426_v48, 2  ;;  %v1464_v32 = vrot.slane %v1446_v23, %v3382_v26  ;;  %v1491_v22 = vrot.slane %v1447_v5, %v3385_v27 }
 0x459   :  { %v1400_v24 = vadd.f32 %v1399_v21, %v1398_v63  ;;  %v1417_v57 = vrot.slane %v1416_v30, 1  ;;  %v1405_v28 = vrot.slane %v1404_v54, 1  ;;  %v1422_v29 = vadd.f32 %v1421_v33, %v1420_v20 }
 0x45a   :  { %v1411_v60 = vrot.slane %v1410_v55, 1  ;;  %v1428_v52 = vadd.f32 %v1427_v56, %v1426_v48  ;;  %v1483_v21 = vrot.slane %v1447_v5, %v3382_v26 }
 0x45b   :  { %v1418_v3 = vadd.f32 %v1417_v57, %v1416_v30  ;;  %v1431_v14 = vmul.f32 0.125, %v1400_v24  ;;  %v1406_v19 = vadd.f32 %v1405_v28, %v1404_v54  ;;  %v1423_v43 = vrot.slane %v1422_v29, 1 }
 0x45c   :  { %v1412_v8 = vadd.f32 %v1411_v60, %v1410_v55  ;;  %v1429_v9 = vrot.slane %v1428_v52, 1  ;;  %v1468_v54 = vrot.slane %v1446_v23, %v3392_v31  ;;  %v1487_v28 = vrot.slane %v1447_v5, %v3392_v31 }
 0x45d   :  { %v1434_v44 = vmul.f32 0.125, %v1418_v3  ;;  %v1437_v45 = vmul.f32 %v1431_v14, %v1431_v14  ;;  %v1424_v59 = vadd.f32 %v1423_v43, %v1422_v29  ;;  %v1432_v46 = vmul.f32 0.125, %v1406_v19 }
 0x45e   :  { %v1430_v25 = vadd.f32 %v1429_v9, %v1428_v52  ;;  %v1433_v12 = vmul.f32 0.125, %v1412_v8  ;;  %v1448_v63 = vsub.f32 %v3537_v1, %v1431_v14  ;;  %v1472_v19 = vrot.slane %v1446_v23, %v3385_v27 }
 0x45f   :  { %v1440_v50 = vsub.f32 %v1434_v44, %v1437_v45  ;;  %v1435_v51 = vmul.f32 0.125, %v1424_v59  ;;  %v1438_v53 = vmul.f32 %v1432_v46, %v1432_v46  ;;  %v1449_v30 = vsub.f32 %v3542_v11, %v1432_v46 }
 0x460   :  { %v1436_v13 = vmul.f32 0.125, %v1430_v25  ;;  %v1439_v15 = vmul.f32 %v1433_v12, %v1433_v12  ;;  %v1450_v1 = vsub.f32 %v3549_v40, %v1433_v12 }
 0x461   :  { %v1443_v58 = vmax.f32 %v1440_v50, 0.0  ;;  %v1441_v61 = vsub.f32 %v1435_v51, %v1438_v53 }
 0x462   :  { %v1442_v16 = vsub.f32 %v1436_v13, %v1439_v15 }
 0x463   :  { %v1451_v62 = vadd.f32 1e-05, %v1443_v58  ;;  %v1444_v2 = vmax.f32 %v1441_v61, 0.0 }
 0x464   :  { %v1445_v6 = vmax.f32 %v1442_v16, 0.0 }
 0x465   :  { %2838 = vrsqrt.f32 %v1451_v62  ;;  %v1452_v7 = vadd.f32 1e-05, %v1444_v2 }
 0x466   :  { %v1453_v17 = vadd.f32 1e-05, %v1445_v6 }
 0x467   :  { %2840 = vrsqrt.f32 %v1452_v7 }
 0x468   :  { %2842 = vrsqrt.f32 %v1453_v17 }
 0x472   :  { %v2839_v18 = vpop.eup %2838 }
 0x473   :  { %v1457_v20 = vmul.f32 %v2839_v18, %v1448_v63 }
 0x474   :  { %v2841_v33 = vpop.eup %2840 }
 0x475   :  { %v1476_v24 = vmul.f32 %v1464_v32, %v1457_v20  ;;  %v1458_v57 = vmul.f32 %v2841_v33, %v1449_v30  ;;  %v2843_v43 = vpop.eup %2842 }
 0x476   :  { %v1459_v42 = vmul.f32 %v2843_v43, %v1450_v1 }
 0x477   :  { %v1495_v29 = vadd.f32 %v1483_v21, %v1476_v24  ;;  %v1477_v34 = vmul.f32 %v1468_v54, %v1458_v57 }
 0x478   :  { %v1478_v45 = vmul.f32 %v1472_v19, %v1459_v42 }
 0x479   :  { %v1498_v35 = vmax.f32 %v1495_v29, 0.0  ;;  %v1496_v37 = vadd.f32 %v1487_v28, %v1477_v34 }
 0x47a   :  { %v1497_v59 = vadd.f32 %v1491_v22, %v1478_v45 }
 0x47b   :  { %v1501_v3 = vadd.f32 %v1498_v35, %v3503_v38  ;;  %v1499_v14 = vmax.f32 %v1496_v37, 0.0 }
 0x47c   :  { %v1500_v38 = vmax.f32 %v1497_v59, 0.0 }
 0x47d   :  { %1504 = vst [vmem:[#allocation13] sm:$0xff] %v1501_v3  ;;  %v1505_v11 = vpack.c.bf16 %v1501_v3, %v1501_v3  ;;  %v3566_v41 = vadd.f32 %v1499_v14, %v3506_v39 }
 0x47e   :  { %v3572_v40 = vadd.f32 %v1500_v38, %v3499_v36 }
 0x47f   :  { %v1507_v44 = vsel %vm93_vm1, %v1505_v11, 0 }
 0x480   :  { %2615 = vmatpush3.bf16.msra.mxu0 %v1507_v44 }
 0x483   :  { %2617 = vmatmul.mubr.msk.bf16.vlgmr.msra.gmra.mxu0 %vm89_vm2, %v3297_v4 }
 0x543   :  { %v3574_v46 = vpop.f32.mrf.mxu0 }
 0x544   :  { %v1549_v27 = vpack.c.bf16 %v3574_v46, %v3574_v46 }
 0x545   :  { %v2618_v39 = vpop.f32.mrf.mxu0 }
 0x547   :  { %v1546_v47 = vpop.f32.mrf.mxu0 }
 0x549   :  { %v2619_v48 = vpop.f32.mrf.mxu0 }
 0x54a   :  { %3210 = dma.done.wait [#allocation3 + $0x1], 2048 }
 0x54b   :  { %3211 = vsyncadd [#allocation3 + $0x1], 4294965248  ;;  %s1553_s0 = scalar_lea.hbm %s3684_s3, 896  ;;  %1687 = vmatprep.mubr.bf16.mxu0 %v3232_v10  ;;  %s3119_s18 = scalar_lea.vmem %s3301_s5, 2048 }
 0x54c   :  { %p3120_p2 = scmp.ne.s32.totalorder %s3301_s5, %s3119_s18  ;;  %p3125_p4 = scmp.lt.s32.totalorder %s3306_s20, %s3119_s18 }
 0x54e   :  { %p3126_p5 = por %p3125_p4, %p3033_p12 }
 0x550   :  { %p3127_p6 = pnand %p3126_p5, %p3120_p2 }
 0x552   :  { %3130 = shalt.err (!%p3127_p6)  }
 0x553   :  { %1558 = dma.hbm_to_vmem [thread:$0]  %s1553_s0, 2048, %s3301_s5, [#allocation3], %s3228_s21, %s3229_s22, %s3234_s15 }
 0x554   :  { %v2844_v36 = vld [vmem:[#allocation2 + $0x2d4] ss:$24 sps:$4 sm:$0xff]   ;;  %v2846_v49 = vld [vmem:[#allocation2 + $0x2d0] ss:$24 sps:$4 sm:$0xff]   ;;  %v2847_v50 = vld [vmem:[#allocation2 + $0x2a4] ss:$24 sps:$4 sm:$0xff]  }
 0x555   :  { %1655 = vmatprep.subr.bf16.mxu0 %v2844_v36  ;;  %v2849_v51 = vld [vmem:[#allocation2 + $0x2a0] ss:$24 sps:$4 sm:$0xff]   ;;  %v2850_v53 = vld [vmem:[#allocation2 + $0x274] ss:$24 sps:$4 sm:$0xff]   ;;  %v2852_v55 = vld [vmem:[#allocation2 + $0x270] ss:$24 sps:$4 sm:$0xff]  }
 0x556   :  { %1656 = vmatpush1.bf16.msra.mxu0 %v2846_v49  ;;  %v2853_v56 = vld [vmem:[#allocation2 + $0x244] ss:$24 sps:$4 sm:$0xff]   ;;  %v2855_v58 = vld [vmem:[#allocation2 + $0x240] ss:$24 sps:$4 sm:$0xff]   ;;  %v2856_v61 = vld [vmem:[#allocation2 + $0x214] ss:$24 sps:$4 sm:$0xff]  }
 0x557   :  { %1657 = vmatprep.subr.bf16.mxu0 %v2847_v50  ;;  %v2858_v60 = vld [vmem:[#allocation2 + $0x210] ss:$24 sps:$4 sm:$0xff]   ;;  %v2859_v52 = vld [vmem:[#allocation2 + $0x1e4] ss:$24 sps:$4 sm:$0xff]   ;;  %v2861_v62 = vld [vmem:[#allocation2 + $0x1e0] ss:$24 sps:$4 sm:$0xff]  }
 0x558   :  { %v2862_v2 = vld [vmem:[#allocation2 + $0x1b4] ss:$24 sps:$4 sm:$0xff]   ;;  %v2864_v8 = vld [vmem:[#allocation2 + $0x1b0] ss:$24 sps:$4 sm:$0xff]   ;;  %v2865_v9 = vld [vmem:[#allocation2 + $0x184] ss:$24 sps:$4 sm:$0xff]  }
 0x559   :  { %v2867_v7 = vld [vmem:[#allocation2 + $0x180] ss:$24 sps:$4 sm:$0xff]  }
 0x55a   :  { %1658 = vmatpush1.bf16.msra.mxu0 %v2849_v51  ;;  %v1732_v51 = vld [vmem:[#allocation10 + $0xc] sm:$0x3] }
 0x55b   :  { %1659 = vmatprep.subr.bf16.mxu0 %v2850_v53  ;;  %v1733_v53 = vld [vmem:[#allocation12 + $0xc] sm:$0x3] }
 0x55e   :  { %1660 = vmatpush1.bf16.msra.mxu0 %v2852_v55 }
 0x55f   :  { %1661 = vmatprep.subr.bf16.mxu0 %v2853_v56  ;;  %v1746_v56 = vrot.slane %v1732_v51, %v3382_v26 }
 0x562   :  { %1662 = vmatpush1.bf16.msra.mxu0 %v2855_v58 }
 0x563   :  { %1663 = vmatprep.subr.bf16.mxu0 %v2856_v61 }
 0x566   :  { %1664 = vmatpush1.bf16.msra.mxu0 %v2858_v60  ;;  %v1759_v60 = vrot.slane %v1733_v53, %v3382_v26 }
 0x567   :  { %1665 = vmatprep.subr.bf16.mxu0 %v2859_v52 }
 0x56a   :  { %1666 = vmatpush1.bf16.msra.mxu0 %v2861_v62  ;;  %v1750_v62 = vrot.slane %v1732_v51, %v3392_v31 }
 0x56b   :  { %1667 = vmatprep.subr.bf16.mxu0 %v2862_v2 }
 0x56e   :  { %1668 = vmatpush1.bf16.msra.mxu0 %v2864_v8 }
 0x56f   :  { %1669 = vmatprep.subr.bf16.mxu0 %v2865_v9 }
 0x572   :  { %1670 = vmatpush1.bf16.msra.mxu0 %v2867_v7  ;;  %v1763_v7 = vrot.slane %v1733_v53, %v3392_v31 }
 0x575   :  { %1688 = vmatmul.mubr.bf16.vlgmr.msra.gmra.mxu0 %v1505_v11 }
 0x635   :  { %v1689_v25 = vpop.f32.mrf.mxu0 }
 0x636   :  { %v1696_v12 = vmul.f32 %v1689_v25, %v1689_v25  ;;  %v1698_v13 = vrot.slane %v1689_v25, 4 }
 0x637   :  { %v1691_v15 = vpop.f32.mrf.mxu0 }
 0x638   :  { %v1699_v16 = vadd.f32 %v1698_v13, %v1689_v25  ;;  %v1710_v6 = vrot.slane %v1696_v12, 4  ;;  %v1697_v23 = vmul.f32 %v1691_v15, %v1691_v15  ;;  %v1704_v17 = vrot.slane %v1691_v15, 4 }
 0x639   :  { %v1693_v5 = vpop.f32.mrf.mxu0 }
 0x63a   :  { %v1700_v63 = vrot.slane %v1699_v16, 2  ;;  %v1711_v32 = vadd.f32 %v1710_v6, %v1696_v12  ;;  %v1705_v18 = vadd.f32 %v1704_v17, %v1691_v15  ;;  %v1716_v20 = vrot.slane %v1697_v23, 4 }
 0x63b   :  { %v1694_v21 = vpop.f32.mrf.mxu0 }
 0x63c   :  { %v1701_v30 = vadd.f32 %v1700_v63, %v1699_v16  ;;  %v1712_v54 = vrot.slane %v1711_v32, 2  ;;  %v1706_v33 = vrot.slane %v1705_v18, 2  ;;  %v1717_v24 = vadd.f32 %v1716_v20, %v1697_v23 }
 0x63e   :  { %v1702_v57 = vrot.slane %v1701_v30, 1  ;;  %v1713_v28 = vadd.f32 %v1712_v54, %v1711_v32  ;;  %v1707_v29 = vadd.f32 %v1706_v33, %v1705_v18  ;;  %v1718_v34 = vrot.slane %v1717_v24, 2 }
 0x640   :  { %v1703_v35 = vadd.f32 %v1702_v57, %v1701_v30  ;;  %v1714_v37 = vrot.slane %v1713_v28, 1  ;;  %v1708_v1 = vrot.slane %v1707_v29, 1  ;;  %v1719_v3 = vadd.f32 %v1718_v34, %v1717_v24 }
 0x642   :  { %v1715_v14 = vadd.f32 %v1714_v37, %v1713_v28  ;;  %v1722_v19 = vmul.f32 0.125, %v1703_v35  ;;  %v1709_v43 = vadd.f32 %v1708_v1, %v1707_v29  ;;  %v1720_v11 = vrot.slane %v1719_v3, 1 }
 0x644   :  { %v1724_v22 = vmul.f32 0.125, %v1715_v14  ;;  %v1726_v42 = vmul.f32 %v1722_v19, %v1722_v19  ;;  %v1721_v44 = vadd.f32 %v1720_v11, %v1719_v3  ;;  %v1723_v45 = vmul.f32 0.125, %v1709_v43 }
 0x645   :  { %v1734_v55 = vsub.f32 %v1689_v25, %v1722_v19 }
 0x646   :  { %v1728_v59 = vsub.f32 %v1724_v22, %v1726_v42  ;;  %v1725_v38 = vmul.f32 0.125, %v1721_v44  ;;  %v1727_v39 = vmul.f32 %v1723_v45, %v1723_v45  ;;  %v1735_v52 = vsub.f32 %v1691_v15, %v1723_v45 }
 0x648   :  { %v1730_v47 = vmax.f32 %v1728_v59, 0.0  ;;  %v1729_v48 = vsub.f32 %v1725_v38, %v1727_v39 }
 0x64a   :  { %v1736_v36 = vadd.f32 1e-05, %v1730_v47  ;;  %v1731_v49 = vmax.f32 %v1729_v48, 0.0 }
 0x64c   :  { %2868 = vrsqrt.f32 %v1736_v36  ;;  %v1737_v50 = vadd.f32 1e-05, %v1731_v49 }
 0x64e   :  { %2870 = vrsqrt.f32 %v1737_v50 }
 0x659   :  { %v2869_v58 = vpop.eup %2868 }
 0x65a   :  { %v1740_v61 = vmul.f32 %v2869_v58, %v1734_v55 }
 0x65b   :  { %v2871_v2 = vpop.eup %2870 }
 0x65c   :  { %v1753_v8 = vmul.f32 %v1746_v56, %v1740_v61  ;;  %v1741_v9 = vmul.f32 %v2871_v2, %v1735_v52 }
 0x65e   :  { %v1766_v12 = vadd.f32 %v1759_v60, %v1753_v8  ;;  %v1754_v13 = vmul.f32 %v1750_v62, %v1741_v9 }
 0x660   :  { %v1768_v16 = vmax.f32 %v1766_v12, 0.0  ;;  %v1767_v6 = vadd.f32 %v1763_v7, %v1754_v13 }
 0x662   :  { %v3597_v25 = vadd.f32 %v1768_v16, %v3566_v41  ;;  %v1769_v23 = vmax.f32 %v1767_v6, 0.0 }
 0x664   :  { %v3600_v17 = vadd.f32 %v1769_v23, %v3572_v40 }
 0x665   :  { %3212 = dma.done.wait [#allocation3], 2048 }
 0x666   :  { %3213 = vsyncadd [#allocation3], 4294965248  ;;  %s1774_s23 = scalar_lea.hbm %s3684_s3, 1024  ;;  %1908 = vmatprep.mubr.bf16.mxu1 %v3232_v10  ;;  %2620 = vmatprep.subr.bf16.mxu0 %v3225_v0  ;;  %s3142_s24 = scalar_lea.vmem %s3327_s30, 1024 }
 0x667   :  { %p3143_p7 = scmp.ne.s32.totalorder %s3327_s30, %s3142_s24  ;;  %p3148_p8 = scmp.lt.s32.totalorder %s3306_s20, %s3142_s24 }
 0x669   :  { %p3149_p9 = por %p3148_p8, %p3055_p3 }
 0x66b   :  { %p3150_p10 = pnand %p3149_p9, %p3143_p7 }
 0x66d   :  { %3153 = shalt.err (!%p3150_p10)  }
 0x66e   :  { %s3235_s25 = smov 4   ;;  %2622 = vmatprep.mubr.msk.bf16.mxu0 %vm3226_vm0, %v3225_v0 }
 0x66f   :  { %1779 = dma.hbm_to_vmem [thread:$0]  %s1774_s23, 1024, %s3327_s30, [#allocation3 + $0x1], %s3228_s21, %s3229_s22, %s3235_s25 }
 0x670   :  { %v2872_v41 = vld [vmem:[#allocation2 + $0x154] ss:$24 sps:$4 sm:$0xff]   ;;  %v2874_v10 = vld [vmem:[#allocation2 + $0x150] ss:$24 sps:$4 sm:$0xff]   ;;  %v2875_v40 = vld [vmem:[#allocation2 + $0x124] ss:$24 sps:$4 sm:$0xff]  }
 0x671   :  { %1876 = vmatprep.subr.bf16.mxu1 %v2872_v41  ;;  %v2877_v15 = vld [vmem:[#allocation2 + $0x120] ss:$24 sps:$4 sm:$0xff]   ;;  %v2878_v5 = vld [vmem:[#allocation2 + $0xf4] ss:$24 sps:$4 sm:$0xff]   ;;  %v2880_v63 = vld [vmem:[#allocation2 + $0xf0] ss:$24 sps:$4 sm:$0xff]  }
 0x672   :  { %1877 = vmatpush1.bf16.msra.mxu1 %v2874_v10  ;;  %v2881_v32 = vld [vmem:[#allocation2 + $0xc4] ss:$24 sps:$4 sm:$0xff]   ;;  %v2883_v18 = vld [vmem:[#allocation2 + $0xc0] ss:$24 sps:$4 sm:$0xff]   ;;  %v2884_v20 = vld [vmem:[#allocation2 + $0x94] ss:$24 sps:$4 sm:$0xff]  }
 0x673   :  { %1878 = vmatprep.subr.bf16.mxu1 %v2875_v40  ;;  %v2886_v21 = vld [vmem:[#allocation2 + $0x90] ss:$24 sps:$4 sm:$0xff]   ;;  %v2887_v30 = vld [vmem:[#allocation2 + $0x64] ss:$24 sps:$4 sm:$0xff]   ;;  %v2889_v54 = vld [vmem:[#allocation2 + $0x60] ss:$24 sps:$4 sm:$0xff]  }
 0x674   :  { %v2890_v33 = vld [vmem:[#allocation2 + $0x34] ss:$24 sps:$4 sm:$0xff]   ;;  %v2892_v24 = vld [vmem:[#allocation2 + $0x30] ss:$24 sps:$4 sm:$0xff]   ;;  %v2893_v57 = vld [vmem:[#allocation2 + $0x4] ss:$24 sps:$4 sm:$0xff]  }
 0x675   :  { %v2895_v28 = vld [vmem:[#allocation2] ss:$24 sps:$4 sm:$0xff]   ;;  %v1954_v10 = vld [vmem:[#allocation12 + $0xe] sm:$0x3] }
 0x676   :  { %1879 = vmatpush1.bf16.msra.mxu1 %v2877_v15  ;;  %v1953_v41 = vld [vmem:[#allocation10 + $0xe] sm:$0x3] }
 0x677   :  { %1880 = vmatprep.subr.bf16.mxu1 %v2878_v5  ;;  %v1967_v15 = vrot.slane %v1953_v41, %v3382_v26 }
 0x67a   :  { %1881 = vmatpush1.bf16.msra.mxu1 %v2880_v63 }
 0x67b   :  { %1882 = vmatprep.subr.bf16.mxu1 %v2881_v32  ;;  %v1980_v32 = vrot.slane %v1954_v10, %v3382_v26 }
 0x67e   :  { %1883 = vmatpush1.bf16.msra.mxu1 %v2883_v18 }
 0x67f   :  { %1884 = vmatprep.subr.bf16.mxu1 %v2884_v20  ;;  %v1971_v20 = vrot.slane %v1953_v41, %v3392_v31 }
 0x682   :  { %1885 = vmatpush1.bf16.msra.mxu1 %v2886_v21 }
 0x683   :  { %1886 = vmatprep.subr.bf16.mxu1 %v2887_v30 }
 0x686   :  { %1887 = vmatpush1.bf16.msra.mxu1 %v2889_v54 }
 0x687   :  { %1888 = vmatprep.subr.bf16.mxu1 %v2890_v33  ;;  %v1984_v33 = vrot.slane %v1954_v10, %v3392_v31 }
 0x68a   :  { %1889 = vmatpush1.bf16.msra.mxu1 %v2892_v24 }
 0x68b   :  { %1890 = vmatprep.subr.bf16.mxu1 %v2893_v57 }
 0x68e   :  { %1891 = vmatpush1.bf16.msra.mxu1 %v2895_v28 }
 0x691   :  { %1909 = vmatmul.mubr.bf16.vlgmr.msra.gmra.mxu1 %v1549_v27 }
 0x751   :  { %v1910_v29 = vpop.f32.mrf.mxu1 }
 0x752   :  { %v1917_v34 = vmul.f32 %v1910_v29, %v1910_v29  ;;  %v1919_v35 = vrot.slane %v1910_v29, 4 }
 0x753   :  { %v1912_v37 = vpop.f32.mrf.mxu1 }
 0x754   :  { %v1920_v1 = vadd.f32 %v1919_v35, %v1910_v29  ;;  %v1931_v3 = vrot.slane %v1917_v34, 4  ;;  %v1918_v14 = vmul.f32 %v1912_v37, %v1912_v37  ;;  %v1925_v19 = vrot.slane %v1912_v37, 4 }
 0x755   :  { %v1914_v43 = vpop.f32.mrf.mxu1 }
 0x756   :  { %v1921_v11 = vrot.slane %v1920_v1, 2  ;;  %v1932_v22 = vadd.f32 %v1931_v3, %v1917_v34  ;;  %v1926_v42 = vadd.f32 %v1925_v19, %v1912_v37  ;;  %v1937_v44 = vrot.slane %v1918_v14, 4 }
 0x757   :  { %v1915_v45 = vpop.f32.mrf.mxu1 }
 0x758   :  { %v1922_v59 = vadd.f32 %v1921_v11, %v1920_v1  ;;  %v1933_v38 = vrot.slane %v1932_v22, 2  ;;  %v1927_v39 = vrot.slane %v1926_v42, 2  ;;  %v1938_v47 = vadd.f32 %v1937_v44, %v1918_v14 }
 0x75a   :  { %v1923_v46 = vrot.slane %v1922_v59, 1  ;;  %v1934_v27 = vadd.f32 %v1933_v38, %v1932_v22  ;;  %v1928_v48 = vadd.f32 %v1927_v39, %v1926_v42  ;;  %v1939_v36 = vrot.slane %v1938_v47, 2 }
 0x75c   :  { %v1924_v49 = vadd.f32 %v1923_v46, %v1922_v59  ;;  %v1935_v50 = vrot.slane %v1934_v27, 1  ;;  %v1929_v51 = vrot.slane %v1928_v48, 1  ;;  %v1940_v53 = vadd.f32 %v1939_v36, %v1938_v47 }
 0x75e   :  { %v1936_v55 = vadd.f32 %v1935_v50, %v1934_v27  ;;  %v1943_v56 = vmul.f32 0.125, %v1924_v49  ;;  %v1930_v58 = vadd.f32 %v1929_v51, %v1928_v48  ;;  %v1941_v61 = vrot.slane %v1940_v53, 1 }
 0x760   :  { %v1945_v60 = vmul.f32 0.125, %v1936_v55  ;;  %v1947_v52 = vmul.f32 %v1943_v56, %v1943_v56  ;;  %v1942_v62 = vadd.f32 %v1941_v61, %v1940_v53  ;;  %v1944_v2 = vmul.f32 0.125, %v1930_v58 }
 0x761   :  { %v1955_v40 = vsub.f32 %v1910_v29, %v1943_v56 }
 0x762   :  { %v1949_v8 = vsub.f32 %v1945_v60, %v1947_v52  ;;  %v1946_v9 = vmul.f32 0.125, %v1942_v62  ;;  %v1948_v7 = vmul.f32 %v1944_v2, %v1944_v2  ;;  %v1956_v18 = vsub.f32 %v1912_v37, %v1944_v2 }
 0x764   :  { %v1951_v12 = vmax.f32 %v1949_v8, 0.0  ;;  %v1950_v13 = vsub.f32 %v1946_v9, %v1948_v7 }
 0x766   :  { %v1957_v16 = vadd.f32 1e-05, %v1951_v12  ;;  %v1952_v6 = vmax.f32 %v1950_v13, 0.0 }
 0x768   :  { %2896 = vrsqrt.f32 %v1957_v16  ;;  %v1958_v23 = vadd.f32 1e-05, %v1952_v6 }
 0x76a   :  { %2898 = vrsqrt.f32 %v1958_v23 }
 0x775   :  { %v2897_v5 = vpop.eup %2896 }
 0x776   :  { %v1961_v63 = vmul.f32 %v2897_v5, %v1955_v40 }
 0x777   :  { %v2899_v21 = vpop.eup %2898 }
 0x778   :  { %v1974_v30 = vmul.f32 %v1967_v15, %v1961_v63  ;;  %v1962_v54 = vmul.f32 %v2899_v21, %v1956_v18 }
 0x77a   :  { %v1987_v24 = vadd.f32 %v1980_v32, %v1974_v30  ;;  %v1975_v57 = vmul.f32 %v1971_v20, %v1962_v54 }
 0x77c   :  { %v1989_v28 = vmax.f32 %v1987_v24, 0.0  ;;  %v1988_v34 = vadd.f32 %v1984_v33, %v1975_v57 }
 0x77e   :  { %v1991_v29 = vadd.f32 %v1989_v28, %v3597_v25  ;;  %v1990_v35 = vmax.f32 %v1988_v34, 0.0 }
 0x780   :  { %1994 = vst [vmem:[#allocation13 + $0x8] sm:$0xff] %v1991_v29  ;;  %v1995_v1 = vpack.c.bf16 %v1991_v29, %v1991_v29  ;;  %v3628_v3 = vadd.f32 %v1990_v35, %v3600_v17 }
 0x782   :  { %v1997_v26 = vsel %vm93_vm1, %v1995_v1, 0 }
 0x783   :  { %2621 = vmatpush3.bf16.msra.mxu0 %v1997_v26 }
 0x786   :  { %2623 = vmatmul.mubr.msk.bf16.vlgmr.msra.gmra.mxu0 %vm89_vm2, %v3297_v4 }
 0x846   :  { %v3633_v37 = vpop.f32.mrf.mxu0 }
 0x847   :  { %v2039_v31 = vpack.c.bf16 %v3633_v37, %v3633_v37 }
 0x848   :  { %v2624_v14 = vpop.f32.mrf.mxu0 }
 0x84a   :  { %v2036_v19 = vpop.f32.mrf.mxu0 }
 0x84c   :  { %v2625_v25 = vpop.f32.mrf.mxu0 }
 0x84d   :  { %3214 = dma.done.wait [#allocation3 + $0x1], 1024 }
 0x84e   :  { %3215 = vsyncadd [#allocation3 + $0x1], 4294966272  ;;  %s2043_s28 = scalar_lea.hbm %s3684_s3, 1088  ;;  %2626 = vmatprep.subr.bf16.mxu0 %v3225_v0  ;;  %2642 = vmatprep.mubr.msk.bf16.mxu0 %vm3226_vm0, %v3225_v0  ;;  %s3165_s29 = scalar_lea.vmem %s3301_s5, 1024 }
 0x84f   :  { %p3166_p3 = scmp.ne.s32.totalorder %s3301_s5, %s3165_s29  ;;  %p3171_p11 = scmp.lt.s32.totalorder %s3306_s20, %s3165_s29 }
 0x851   :  { %p3172_p13 = por %p3171_p11, %p3033_p12 }
 0x853   :  { %p3173_p0 = pnand %p3172_p13, %p3166_p3 }
 0x855   :  { %3176 = shalt.err (!%p3173_p0)  }
 0x856   :  { %2048 = dma.hbm_to_vmem [thread:$0]  %s2043_s28, 1024, %s3301_s5, [#allocation3], %s3228_s21, %s3229_s22, %s3235_s25  ;;  %v2512_v16 = vld [vmem:[#allocation10 + $0x10] ss:$0 sm:$0xff]  ;;  %v2513_v23 = vld [vmem:[#allocation12 + $0x10] ss:$0 sm:$0xff] }
 0x857   :  { %v2900_v4 = vld [vmem:[#allocation2 + $0x2d0] ss:$24 sps:$4 sm:$0xff]   ;;  %v2901_v17 = vld [vmem:[#allocation2 + $0x2a0] ss:$24 sps:$4 sm:$0xff]  }
 0x858   :  { %2627 = vmatpush3.bf16.msra.mxu0 %v2900_v4  ;;  %v2902_v43 = vld [vmem:[#allocation2 + $0x270] ss:$24 sps:$4 sm:$0xff]   ;;  %v2903_v11 = vld [vmem:[#allocation2 + $0x240] ss:$24 sps:$4 sm:$0xff]  }
 0x859   :  { %2628 = vmatprep.subr.bf16.mxu0 %v3225_v0  ;;  %v2904_v22 = vld [vmem:[#allocation2 + $0x210] ss:$24 sps:$4 sm:$0xff]   ;;  %v2905_v42 = vld [vmem:[#allocation2 + $0x1e0] ss:$24 sps:$4 sm:$0xff]  }
 0x85a   :  { %v2906_v44 = vld [vmem:[#allocation2 + $0x1b0] ss:$24 sps:$4 sm:$0xff]   ;;  %v2907_v45 = vld [vmem:[#allocation2 + $0x180] ss:$24 sps:$4 sm:$0xff]  }
 0x85c   :  { %2629 = vmatpush3.bf16.msra.mxu0 %v2901_v17 }
 0x85d   :  { %2630 = vmatprep.subr.bf16.mxu0 %v3225_v0 }
 0x860   :  { %2631 = vmatpush3.bf16.msra.mxu0 %v2902_v43 }
 0x861   :  { %2632 = vmatprep.subr.bf16.mxu0 %v3225_v0 }
 0x864   :  { %2633 = vmatpush3.bf16.msra.mxu0 %v2903_v11 }
 0x865   :  { %2634 = vmatprep.subr.bf16.mxu0 %v3225_v0 }
 0x868   :  { %2635 = vmatpush3.bf16.msra.mxu0 %v2904_v22 }
 0x869   :  { %2636 = vmatprep.subr.bf16.mxu0 %v3225_v0 }
 0x86c   :  { %2637 = vmatpush3.bf16.msra.mxu0 %v2905_v42 }
 0x86d   :  { %2638 = vmatprep.subr.bf16.mxu0 %v3225_v0 }
 0x870   :  { %2639 = vmatpush3.bf16.msra.mxu0 %v2906_v44 }
 0x871   :  { %2640 = vmatprep.subr.bf16.mxu0 %v3225_v0 }
 0x874   :  { %2641 = vmatpush3.bf16.msra.mxu0 %v2907_v45 }
 0x877   :  { %2643 = vmatmul.mubr.bf16.vlgmr.msra.gmra.mxu0 %v1995_v1 }
 0x937   :  { %v2147_v59 = vpop.f32.mrf.mxu0 }
 0x938   :  { %v2153_v38 = vmul.f32 %v2147_v59, %v2147_v59  ;;  %v2154_v39 = vrot.slane %v2147_v59, 4 }
 0x939   :  { %v2644_v47 = vpop.f32.mrf.mxu0 }
 0x93a   :  { %v2155_v46 = vadd.f32 %v2154_v39, %v2147_v59  ;;  %v2160_v27 = vrot.slane %v2153_v38, 4 }
 0x93b   :  { %v2150_v48 = vpop.f32.mrf.mxu0 }
 0x93c   :  { %v2156_v36 = vrot.slane %v2155_v46, 2  ;;  %v2161_v49 = vadd.f32 %v2160_v27, %v2153_v38 }
 0x93d   :  { %v2645_v50 = vpop.f32.mrf.mxu0 }
 0x93e   :  { %v2157_v51 = vadd.f32 %v2156_v36, %v2155_v46  ;;  %v2162_v53 = vrot.slane %v2161_v49, 2 }
 0x940   :  { %v2158_v55 = vrot.slane %v2157_v51, 1  ;;  %v2163_v56 = vadd.f32 %v2162_v53, %v2161_v49 }
 0x942   :  { %v2159_v58 = vadd.f32 %v2158_v55, %v2157_v51  ;;  %v2164_v61 = vrot.slane %v2163_v56, 1 }
 0x944   :  { %v2165_v60 = vadd.f32 %v2164_v61, %v2163_v56  ;;  %v2166_v52 = vmul.f32 0.125, %v2159_v58 }
 0x946   :  { %v2167_v62 = vmul.f32 0.125, %v2165_v60  ;;  %v2168_v2 = vmul.f32 %v2166_v52, %v2166_v52  ;;  %v2173_v12 = vsub.f32 %v2147_v59, %v2166_v52 }
 0x948   :  { %v2169_v8 = vsub.f32 %v2167_v62, %v2168_v2 }
 0x94a   :  { %v2170_v9 = vmax.f32 %v2169_v8, 0.0 }
 0x94c   :  { %v2174_v7 = vadd.f32 1e-05, %v2170_v9 }
 0x94e   :  { %2908 = vrsqrt.f32 %v2174_v7 }
 0x95b   :  { %v2909_v13 = vpop.eup %2908 }
 0x95c   :  { %v2176_v6 = vmul.f32 %v2909_v13, %v2173_v12 }
 0x95e   :  { %v2183_v41 = vmul.f32 %v2512_v16, %v2176_v6 }
 0x960   :  { %v2190_v10 = vadd.f32 %v2513_v23, %v2183_v41 }
 0x962   :  { %v2191_v40 = vmax.f32 %v2190_v10, 0.0 }
 0x964   :  { %v3661_v15 = vadd.f32 %v2191_v40, %v3628_v3 }
 0x965   :  { %3216 = dma.done.wait [#allocation3], 1024 }
 0x966   :  { %3217 = vsyncadd [#allocation3], 4294966272  ;;  %2646 = vmatprep.subr.bf16.mxu1 %v3225_v0  ;;  %2662 = vmatprep.mubr.msk.bf16.mxu1 %vm3226_vm0, %v3225_v0  ;;  %v2910_v5 = vld [vmem:[#allocation2 + $0x150] ss:$24 sps:$4 sm:$0xff]   ;;  %v2911_v63 = vld [vmem:[#allocation2 + $0x120] ss:$24 sps:$4 sm:$0xff]  }
 0x967   :  { %2647 = vmatpush3.bf16.msra.mxu1 %v2910_v5  ;;  %v2912_v32 = vld [vmem:[#allocation2 + $0xf0] ss:$24 sps:$4 sm:$0xff]   ;;  %v2913_v18 = vld [vmem:[#allocation2 + $0xc0] ss:$24 sps:$4 sm:$0xff]   ;;  %v2522_v38 = vld [vmem:[#allocation10 + $0x11] ss:$0 sm:$0xff] }
 0x968   :  { %2648 = vmatprep.subr.bf16.mxu1 %v3225_v0  ;;  %v2914_v20 = vld [vmem:[#allocation2 + $0x90] ss:$24 sps:$4 sm:$0xff]   ;;  %v2915_v21 = vld [vmem:[#allocation2 + $0x60] ss:$24 sps:$4 sm:$0xff]   ;;  %v2523_v47 = vld [vmem:[#allocation12 + $0x11] ss:$0 sm:$0xff] }
 0x969   :  { %v2916_v30 = vld [vmem:[#allocation2 + $0x30] ss:$24 sps:$4 sm:$0xff]   ;;  %v2917_v54 = vld [vmem:[#allocation2] ss:$24 sps:$4 sm:$0xff]   ;;  %s3236_s3 = smov [#allocation13]  }
 0x96a   :  { %s2346_s5 = sshll.u32 %s3236_s3, 4  ;;  %s2347_s5 = int_to_ptr.vmem [resolvable:$true] %s2346_s5 }
 0x96b   :  { %2649 = vmatpush3.bf16.msra.mxu1 %v2911_v63  ;;  %s3178_s20 = scalar_lea.vmem %s2347_s5, 384  ;;  %p3183_p1 = scmp.lt.s32.totalorder %s2347_s5, %s2347_s5 }
 0x96c   :  { %2650 = vmatprep.subr.bf16.mxu1 %v3225_v0  ;;  %p3179_p12 = scmp.ne.s32.totalorder %s2347_s5, %s3178_s20  ;;  %p3184_p2 = scmp.lt.s32.totalorder %s3178_s20, %s3178_s20 }
 0x96e   :  { %p3185_p4 = por %p3184_p2, %p3183_p1 }
 0x96f   :  { %2651 = vmatpush3.bf16.msra.mxu1 %v2912_v32 }
 0x970   :  { %2652 = vmatprep.subr.bf16.mxu1 %v3225_v0  ;;  %p3186_p5 = pnand %p3185_p4, %p3179_p12 }
 0x973   :  { %2653 = vmatpush3.bf16.msra.mxu1 %v2913_v18 }
 0x974   :  { %2654 = vmatprep.subr.bf16.mxu1 %v3225_v0 }
 0x977   :  { %2655 = vmatpush3.bf16.msra.mxu1 %v2914_v20 }
 0x978   :  { %2656 = vmatprep.subr.bf16.mxu1 %v3225_v0 }
 0x97b   :  { %2657 = vmatpush3.bf16.msra.mxu1 %v2915_v21 }
 0x97c   :  { %2658 = vmatprep.subr.bf16.mxu1 %v3225_v0 }
 0x97f   :  { %2659 = vmatpush3.bf16.msra.mxu1 %v2916_v30 }
 0x980   :  { %2660 = vmatprep.subr.bf16.mxu1 %v3225_v0 }
 0x983   :  { %2661 = vmatpush3.bf16.msra.mxu1 %v2917_v54 }
 0x986   :  { %2663 = vmatmul.mubr.bf16.vlgmr.msra.gmra.mxu1 %v2039_v31 }
 0xa46   :  { %v2293_v33 = vpop.f32.mrf.mxu1 }
 0xa47   :  { %v2299_v24 = vmul.f32 %v2293_v33, %v2293_v33  ;;  %v2300_v57 = vrot.slane %v2293_v33, 4 }
 0xa48   :  { %v2664_v28 = vpop.f32.mrf.mxu1 }
 0xa49   :  { %v2301_v34 = vadd.f32 %v2300_v57, %v2293_v33  ;;  %v2306_v29 = vrot.slane %v2299_v24, 4 }
 0xa4a   :  { %v2296_v35 = vpop.f32.mrf.mxu1 }
 0xa4b   :  { %v2302_v1 = vrot.slane %v2301_v34, 2  ;;  %v2307_v3 = vadd.f32 %v2306_v29, %v2299_v24 }
 0xa4c   :  { %v2665_v26 = vpop.f32.mrf.mxu1 }
 0xa4d   :  { %v2303_v14 = vadd.f32 %v2302_v1, %v2301_v34  ;;  %v2308_v19 = vrot.slane %v2307_v3, 2 }
 0xa4f   :  { %v2304_v25 = vrot.slane %v2303_v14, 1  ;;  %v2309_v4 = vadd.f32 %v2308_v19, %v2307_v3 }
 0xa51   :  { %v2305_v0 = vadd.f32 %v2304_v25, %v2303_v14  ;;  %v2310_v17 = vrot.slane %v2309_v4, 1 }
 0xa53   :  { %v2311_v43 = vadd.f32 %v2310_v17, %v2309_v4  ;;  %v2312_v11 = vmul.f32 0.125, %v2305_v0 }
 0xa55   :  { %v2313_v37 = vmul.f32 0.125, %v2311_v43  ;;  %v2314_v31 = vmul.f32 %v2312_v11, %v2312_v11  ;;  %v2319_v45 = vsub.f32 %v2293_v33, %v2312_v11 }
 0xa57   :  { %v2315_v22 = vsub.f32 %v2313_v37, %v2314_v31 }
 0xa59   :  { %v2316_v42 = vmax.f32 %v2315_v22, 0.0 }
 0xa5b   :  { %v2320_v44 = vadd.f32 1e-05, %v2316_v42 }
 0xa5d   :  { %2918 = vrsqrt.f32 %v2320_v44 }
 0xa6a   :  { %v2919_v59 = vpop.eup %2918 }
 0xa6b   :  { %v2322_v39 = vmul.f32 %v2919_v59, %v2319_v45 }
 0xa6d   :  { %v2329_v46 = vmul.f32 %v2522_v38, %v2322_v39 }
 0xa6f   :  { %v2336_v27 = vadd.f32 %v2523_v47, %v2329_v46 }
 0xa71   :  { %v2337_v48 = vmax.f32 %v2336_v27, 0.0 }
 0xa73   :  { %v2338_v36 = vadd.f32 %v2337_v48, %v3661_v15 }
 0xa75   :  { %2340 = vst [vmem:[#allocation13 + $0x10] sm:$0xff] %v2338_v36 }
 0xa76   :  { %3189 = shalt.err (!%p3186_p5)
}
 0xa77   :  { %s3237_s21 = smov 128  }
 0xa78   :  { %2352 = dma.vmem_to_hbm [thread:$0]  %s2347_s5, 384, %s3687_s6, [#allocation6], %s3237_s21, %s3237_s21, %s3234_s15  }
 0xa79   :  { %3218 = dma.done.wait [#allocation6], 384  }
 0xa7a   :  { %3219 = vsyncadd [#allocation6], 4294966912 }
 0xa7b   :  { %2356 = vsyncpa [#allocation5], 1 }
 0xa7c   :  { %2357 = vsyncpa [#allocation8], 1 }
 0xa7d   :  { %2358 = vsyncpa [#allocation11], 1 }
 0xa7e   :  { %2359 = vsyncpa [#allocation6], 1 }
 0xa7f   :  { %2360 = vsyncmov [#allocation3] }
 0xa82   :  { %s2361_s7 = vpop.sfrf %2360 }
 0xa83   :  { %p2524_p6 = scmp.ne.s32.totalorder %s2361_s7, 0 }
 0xa85   :  { %2365 = shalt.err (%p2524_p6)  }
 0xa86   :  { %2367 = vsyncmov [#allocation3 + $0x1] }
 0xa89   :  { %s2368_s8 = vpop.sfrf %2367 }
 0xa8a   :  { %p2525_p7 = scmp.ne.s32.totalorder %s2368_s8, 0 }
 0xa8c   :  { %2372 = shalt.err (%p2525_p7)  }

</bundles_post_ra>
